<compile_context>
chip_gen: v7x
topology: tpu7x:2x2x1
jax: 0.10.0
libtpu: 0.0.40
codegen_flags: <defaults>
</compile_context>

<pallas_src>
import jax
import jax.numpy as jnp
import numpy as np
from jax import lax
from jax.experimental import pallas as pl
from jax.experimental.pallas import tpu as pltpu


def _round_up(x, m):
    return ((x + m - 1) // m) * m


def _pad2(a, rows, cols, dtype):
    a = jnp.asarray(a)
    return jnp.pad(a, ((0, rows - a.shape[0]), (0, cols - a.shape[1]))).astype(dtype)


def _nbytes(arrs):
    return int(sum(int(np.prod(a.shape)) * a.dtype.itemsize for a in arrs))


def _num_edge_splits():
    """2 on v7x (2 TensorCores/chip) so the edge phase uses both; else 1."""
    try:
        kind = jax.devices()[0].device_kind.lower().replace(" ", "")
    except Exception:
        return 1
    return 2 if ("v7" in kind or "tpu7" in kind) else 1


def _vmem_limit_bytes(requested):
    """Clamp the scoped-VMEM request to what the chip actually has."""
    cap = 56 * 1024 * 1024                      # safe on v7x (64 MiB physical)
    try:
        phys = getattr(pltpu.get_tpu_info(), "vmem_capacity_bytes", None)
        if phys:
            cap = int(phys * 0.85)              # leave Mosaic scratch headroom
    except Exception:
        pass
    return int(min(max(requested, 32 * 1024 * 1024), cap))


def _edge_vmem_bytes(N_pad, CP, CEP, HP, te, param_bytes):
    b = 2 * N_pad * CP * 2          # resident x (budget for double buffering)
    b += 2 * te * CEP * 2           # edge_attr tile (double buffered)
    b += 2 * te * 128 * 4           # col/row tile (lane-padded, double buffered)
    b += 2 * N_pad * HP * 4         # f32 accumulator slab
    b += 2 * te * N_pad * 2         # gather + scatter bf16 one-hot masks
    b += N_pad * HP * 4             # scatter partial
    b += 4 * te * HP * 4            # MLP activations / temps
    b += param_bytes + (2 << 20)
    return b


def _node_vmem_bytes(tn, CP, HP, OP, S, param_bytes, residuals):
    b = 2 * tn * CP * 2 + 2 * S * tn * HP * 4 + 2 * tn * OP * 4
    if residuals:
        b += 2 * tn * OP * 2
    b += param_bytes + 4 * tn * max(HP, OP) * 4 + (2 << 20)
    return b


# --------------------------- kernel A: edge phase ----------------------------

def _make_edge_kernel(n_layers):
    # refs: x, edge_attr, idx(col,row), w1x, w1e, b0, (w_i, b_i)*(n_layers-1), agg_out
    def kernel(x_ref, ea_ref, idx_ref, *refs):
        agg_ref = refs[-1]
        pr = refs[:-1]
        w1x, w1e, b0 = pr[0], pr[1], pr[2]
        rest = [(pr[3 + 2 * i], pr[4 + 2 * i]) for i in range(n_layers - 1)]

        x = x_ref[...]                       # [Np, CP]   bf16 (resident)
        ea = ea_ref[...]                     # [TE, CEP]  bf16
        idx = idx_ref[...]                   # [TE, 2]    int32
        col = idx[:, 0:1]                    # [TE, 1] gather index
        row = idx[:, 1:2]                    # [TE, 1] scatter index
        Np = x.shape[0]
        TE = ea.shape[0]

        # Single lane-axis iota reused for BOTH one-hot masks (gather + scatter).
        lane_n = lax.broadcasted_iota(jnp.int32, (TE, Np), 1)

        # gather x[col]: tiled bf16 one-hot on the MXU (exact 0/1 values)
        gather_oh = (lane_n == col).astype(jnp.bfloat16)             # [TE, Np]
        x_col = jnp.dot(gather_oh, x, preferred_element_type=jnp.float32)
        # TODO(synk): for very large N, replace the O(N*E) one-hot gather/scatter
        # with a scalar-prefetch / CSR node-window gather-scatter path.

        # node_mlp_1 on cat([x[col], edge_attr]); first-layer weight is split
        h = (jnp.dot(x_col.astype(jnp.bfloat16), w1x[...],
                     preferred_element_type=jnp.float32)
             + jnp.dot(ea, w1e[...], preferred_element_type=jnp.float32)
             + b0[...])
        h = jnp.maximum(h, 0.0)
        for li, (w, b) in enumerate(rest):
            h = jnp.dot(h.astype(jnp.bfloat16), w[...],
                        preferred_element_type=jnp.float32) + b[...]
            if li < n_layers - 2:
                h = jnp.maximum(h, 0.0)
        # h: [TE, HP] f32. Lane n_hid is exactly 1.0 (baked into the last mlp1
        # bias; padded weight columns >= n_hid are zero and there is no ReLU
        # after the last layer), so the scatter below emits per-node edge counts
        # in lane n_hid for free.

        # scatter-add over `row`: trans-A matmul contracting the edge axis.
        # Padded edges carry row == Np -> all-zero one-hot row -> contribute 0.
        scat_oh = (lane_n == row).astype(jnp.bfloat16)                # [TE, Np]
        partial = lax.dot_general(scat_oh, h.astype(jnp.bfloat16),
                                  (((0,), (0,)), ((), ())),
                                  preferred_element_type=jnp.float32)  # [Np, HP]

        @pl.when(pl.program_id(1) == 0)
        def _():
            agg_ref[...] = jnp.zeros(agg_ref.shape, agg_ref.dtype)

        agg_ref[...] += partial[None, :, :]

    return kernel


# --------------------------- kernel B: node phase ----------------------------

def _make_node_kernel(n_layers, n_hid, residuals, n_splits):
    # refs: x, agg_raw, [x_res], w2x, w2a, b0, (w_i, b_i)*(n_layers-1), out
    def kernel(*refs):
        out_ref = refs[-1]
        x_ref, agg_ref = refs[0], refs[1]
        base = 3 if residuals else 2
        pr = refs[base:-1]
        w2x, w2a, b0 = pr[0], pr[1], pr[2]
        rest = [(pr[3 + 2 * i], pr[4 + 2 * i]) for i in range(n_layers - 1)]

        x = x_ref[...]                          # [TN, CP] bf16
        a = agg_ref[0]                          # [TN, HP] f32 (split-0 slab)
        for s in range(1, n_splits):            # sum per-TensorCore slabs (v7x)
            a = a + agg_ref[s]

        counts = a[:, n_hid:n_hid + 1]
        inv = pl.reciprocal(jnp.maximum(counts, 1.0), approx=True)
        # scaling the count / padded lanes is harmless: their w2a rows are zero
        agg = (a * inv).astype(jnp.bfloat16)

        g = (jnp.dot(x, w2x[...], preferred_element_type=jnp.float32)
             + jnp.dot(agg, w2a[...], preferred_element_type=jnp.float32)
             + b0[...])
        g = jnp.maximum(g, 0.0)
        for li, (w, b) in enumerate(rest):
            g = jnp.dot(g.astype(jnp.bfloat16), w[...],
                        preferred_element_type=jnp.float32) + b[...]
            if li < n_layers - 2:
                g = jnp.maximum(g, 0.0)

        if residuals:
            g = g + refs[2][...].astype(jnp.float32)   # pre-padded bf16 residual

        out_ref[...] = g.astype(out_ref.dtype)

    return kernel


# --------------------------------- wrapper -----------------------------------

def node_model_forward(x, edge_index, edge_attr, params, *, n_layers, residuals,
                       tn=256, te=256, edge_splits=None):
    assert n_layers >= 2, "NodeModel requires n_layers > 1 (matches PyTorch assert)"
    N, c_node = x.shape
    E, c_edge = edge_attr.shape
    n_hid = params["mlp1"][0][0].shape[1]
    c_out = params["mlp2"][-1][0].shape[1]

    f32, bf16 = jnp.float32, jnp.bfloat16
    CP = _round_up(c_node, 128)
    CEP = _round_up(c_edge, 128)
    HP = _round_up(n_hid + 1, 128)     # +1 spare lane carries the fused edge counts
    OP = _round_up(c_out, 128)
    assert HP > n_hid                  # the spare count lane must exist

    S = _num_edge_splits() if edge_splits is None else max(1, int(edge_splits))

    # tile / pad sizes (sublane-/lane-legal blocks)
    tn = _round_up(N, 8) if N <= tn else _round_up(tn, 8)
    N_pad = _round_up(N, tn)
    te = _round_up(min(te, max(8, -(-E // S))), 8)
    E_pad = _round_up(E, S * te)
    nE = E_pad // (S * te)

    x_p = _pad2(x, N_pad, CP, bf16)
    ea_p = _pad2(edge_attr, E_pad, CEP, bf16)

    row = jnp.asarray(edge_index[0], jnp.int32)
    col = jnp.asarray(edge_index[1], jnp.int32)
    # merged (E_pad, 2) indices: [:, 0] = col (gather), [:, 1] = row (scatter).
    # Padded edges scatter to out-of-range node id N_pad -> contribute nothing.
    idx_p = jnp.zeros((E_pad, 2), jnp.int32).at[:, 1].set(N_pad)
    idx_p = idx_p.at[:E, 0].set(col).at[:E, 1].set(row)

    # mlp1 params (first layer split to avoid an in-kernel concat). All pads
    # beyond the true dims are ZERO — the counts trick below relies on it.
    w0, b0 = params["mlp1"][0]
    p1 = [_pad2(w0[:c_node, :], CP, HP, bf16),
          _pad2(w0[c_node:, :], CEP, HP, bf16),
          _pad2(b0.reshape(1, -1), 1, HP, f32)]
    for w, b in params["mlp1"][1:]:
        p1 += [_pad2(w, HP, HP, bf16), _pad2(b.reshape(1, -1), 1, HP, f32)]
    # Bake the edge-count 1.0 into spare lane n_hid of the LAST mlp1 bias.
    p1[-1] = p1[-1].at[0, n_hid].set(1.0)

    # mlp2 params (first layer split: x rows then agg rows)
    w0, b0 = params["mlp2"][0]
    p2 = [_pad2(w0[:c_node, :], CP, HP, bf16),
          _pad2(w0[c_node:, :], HP, HP, bf16),
          _pad2(b0.reshape(1, -1), 1, HP, f32)]
    for li, (w, b) in enumerate(params["mlp2"][1:]):
        wo = OP if li == n_layers - 2 else HP
        p2 += [_pad2(w, HP, wo, bf16), _pad2(b.reshape(1, -1), 1, wo, f32)]

    # ---- kernel A: edge phase (S parallel splits x edge tiles, accumulated) --
    vmem_a = _edge_vmem_bytes(N_pad, CP, CEP, HP, te, _nbytes(p1))
    limit_a = _vmem_limit_bytes(vmem_a)
    # TODO(synk): if vmem_a > limit_a (very large N), fall back to a CSR /
    # scalar-prefetch node-window gather-scatter path instead of resident x.

    edge_in_specs = [
        pl.BlockSpec((N_pad, CP), lambda s, e: (0, 0)),        # x, resident
        pl.BlockSpec((te, CEP), lambda s, e: (s * nE + e, 0)),  # edge_attr tile
        pl.BlockSpec((te, 2), lambda s, e: (s * nE + e, 0)),    # col/row tile
    ] + [pl.BlockSpec(p.shape, lambda s, e: (0, 0)) for p in p1]

    agg_raw = pl.pallas_call(
        _make_edge_kernel(n_layers),
        grid=(S, nE),
        in_specs=edge_in_specs,
        out_specs=pl.BlockSpec((1, N_pad, HP), lambda s, e: (s, 0, 0)),
        out_shape=jax.ShapeDtypeStruct((S, N_pad, HP), f32),
        compiler_params=pltpu.CompilerParams(
            dimension_semantics=("parallel", "arbitrary"),
            vmem_limit_bytes=limit_a),
    )(x_p, ea_p, idx_p, *p1)

    # ---- kernel B: node phase (node axis tiled, parallel) -------------------
    nN = N_pad // tn
    node_inputs = [x_p, agg_raw]
    node_in_specs = [pl.BlockSpec((tn, CP), lambda i: (i, 0)),
                     pl.BlockSpec((S, tn, HP), lambda i: (0, i, 0))]
    if residuals:
        m = min(c_node, c_out)
        x_res = jnp.zeros((N_pad, OP), bf16).at[:N, :m].set(
            jnp.asarray(x, f32)[:, :m].astype(bf16))
        node_inputs.append(x_res)
        node_in_specs.append(pl.BlockSpec((tn, OP), lambda i: (i, 0)))
    node_inputs += p2
    node_in_specs += [pl.BlockSpec(p.shape, lambda i: (0, 0)) for p in p2]

    vmem_b = _node_vmem_bytes(tn, CP, HP, OP, S, _nbytes(p2), residuals)
    out_p = pl.pallas_call(
        _make_node_kernel(n_layers, n_hid, residuals, S),
        grid=(nN,),
        in_specs=node_in_specs,
        out_specs=pl.BlockSpec((tn, OP), lambda i: (i, 0)),
        out_shape=jax.ShapeDtypeStruct((N_pad, OP), f32),
        compiler_params=pltpu.CompilerParams(
            dimension_semantics=("parallel",),
            vmem_limit_bytes=_vmem_limit_bytes(vmem_b)),
    )(*node_inputs)

    return out_p[:N, :c_out]


# ---------------------------- reference & setup ------------------------------

def init_params(key, c_node, c_edge, n_hid, c_out, n_layers):
    def lin(k, fan_in, fan_out):
        k1, k2 = jax.random.split(k)
        bound = 1.0 / np.sqrt(fan_in)
        w = jax.random.uniform(k1, (fan_in, fan_out), jnp.float32, -bound, bound)
        b = jax.random.uniform(k2, (fan_out,), jnp.float32, -bound, bound)
        return w, b

    keys = jax.random.split(key, 2 * n_layers)
    mlp1, mlp2 = [], []
    dims1 = [c_node + c_edge] + [n_hid] * n_layers
    dims2 = [c_node + n_hid] + [n_hid] * (n_layers - 1) + [c_out]
    for i in range(n_layers):
        mlp1.append(lin(keys[i], dims1[i], dims1[i + 1]))
        mlp2.append(lin(keys[n_layers + i], dims2[i], dims2[i + 1]))
    return {"mlp1": mlp1, "mlp2": mlp2}


def reference_forward(x, edge_index, edge_attr, params, residuals):
    row, col = edge_index

    def mlp(layers, v):
        for i, (w, b) in enumerate(layers):
            v = v @ w + b
            if i < len(layers) - 1:
                v = jax.nn.relu(v)
        return v

    out = jnp.concatenate([x[col], edge_attr], axis=1)
    out = mlp(params["mlp1"], out)
    N = x.shape[0]
    sums = jax.ops.segment_sum(out, row, num_segments=N)
    counts = jax.ops.segment_sum(jnp.ones((row.shape[0],), jnp.float32), row,
                                 num_segments=N)
    agg = sums / jnp.maximum(counts, 1.0)[:, None]
    out = jnp.concatenate([x, agg], axis=1)
    out = mlp(params["mlp2"], out)
    if residuals:
        c_out, c_node = out.shape[1], x.shape[1]
        if c_out < c_node:
            xr = x[:, :c_out]
        elif c_out > c_node:
            xr = jnp.pad(x, ((0, 0), (0, c_out - c_node)))
        else:
            xr = x
        out = out + xr
    return out


if __name__ == "__main__":
    # small synthetic graph; sizes chosen to exercise padding + tiling paths
    N, E = 60, 250
    C_NODE, C_EDGE, N_HID, C_OUT = 4, 3, 32, 8
    N_LAYERS, RESIDUALS = 3, True

    key = jax.random.PRNGKey(0)
    kx, ke, kr, kc, kp = jax.random.split(key, 5)
    x = jax.random.normal(kx, (N, C_NODE), jnp.float32)
    edge_attr = jax.random.normal(ke, (E, C_EDGE), jnp.float32)
    row = jax.random.randint(kr, (E,), 0, N, jnp.int32)
    col = jax.random.randint(kc, (E,), 0, N, jnp.int32)
    edge_index = jnp.stack([row, col], axis=0)
    params = init_params(kp, C_NODE, C_EDGE, N_HID, C_OUT, N_LAYERS)

    out = node_model_forward(x, edge_index, edge_attr, params,
                             n_layers=N_LAYERS, residuals=RESIDUALS)
    out = jax.block_until_ready(out)

    ref = jax.block_until_ready(
        reference_forward(x, edge_index, edge_attr, params, RESIDUALS))
    assert out.shape == (N, C_OUT), out.shape
    np.testing.assert_allclose(np.asarray(out), np.asarray(ref),
                               rtol=5e-2, atol=5e-2)

    print("KERNEL_OK")
</pallas_src>

<mosaic_0001>
module attributes {stable_mosaic.version = 11 : i64} {
  func.func @kernel(%arg0: i32, %arg1: i32, %arg2: memref<64x128xbf16, #tpu.memory_space<vmem>>, %arg3: memref<256x128xbf16, #tpu.memory_space<vmem>>, %arg4: memref<256x2xi32, #tpu.memory_space<vmem>>, %arg5: memref<128x128xbf16, #tpu.memory_space<vmem>>, %arg6: memref<128x128xbf16, #tpu.memory_space<vmem>>, %arg7: memref<1x128xf32, #tpu.memory_space<vmem>>, %arg8: memref<128x128xbf16, #tpu.memory_space<vmem>>, %arg9: memref<1x128xf32, #tpu.memory_space<vmem>>, %arg10: memref<128x128xbf16, #tpu.memory_space<vmem>>, %arg11: memref<1x128xf32, #tpu.memory_space<vmem>>, %arg12: memref<1x64x128xf32, #tpu.memory_space<vmem>>) attributes {dimension_semantics = [#tpu.dimension_semantics<parallel>, #tpu.dimension_semantics<arbitrary>], iteration_bounds = array<i64: 1, 1>, scalar_prefetch = 0 : i64, scratch_operands = 0 : i64, tpu.core_type = #tpu.core_type<tc>, window_params = [{pipeline_mode = #tpu.pipeline_mode<synchronous>, transform_indices = @transform_0, window_bounds = array<i64: 64, 128>}, {transform_indices = @transform_1, window_bounds = array<i64: 256, 128>}, {transform_indices = @transform_2, window_bounds = array<i64: 256, 2>}, {pipeline_mode = #tpu.pipeline_mode<synchronous>, transform_indices = @transform_3, window_bounds = array<i64: 128, 128>}, {pipeline_mode = #tpu.pipeline_mode<synchronous>, transform_indices = @transform_4, window_bounds = array<i64: 128, 128>}, {pipeline_mode = #tpu.pipeline_mode<synchronous>, transform_indices = @transform_5, window_bounds = array<i64: 1, 128>}, {pipeline_mode = #tpu.pipeline_mode<synchronous>, transform_indices = @transform_6, window_bounds = array<i64: 128, 128>}, {pipeline_mode = #tpu.pipeline_mode<synchronous>, transform_indices = @transform_7, window_bounds = array<i64: 1, 128>}, {pipeline_mode = #tpu.pipeline_mode<synchronous>, transform_indices = @transform_8, window_bounds = array<i64: 128, 128>}, {pipeline_mode = #tpu.pipeline_mode<synchronous>, transform_indices = @transform_9, window_bounds = array<i64: 1, 128>}, {transform_indices = @transform_10, window_bounds = array<i64: 1, 64, 128>}]} {
    %c0 = arith.constant 0 : index
    %c0_0 = arith.constant 0 : index
    %0 = vector.load %arg2[%c0, %c0_0] : memref<64x128xbf16, #tpu.memory_space<vmem>>, vector<64x128xbf16>
    %c0_1 = arith.constant 0 : index
    %c0_2 = arith.constant 0 : index
    %1 = vector.load %arg3[%c0_1, %c0_2] : memref<256x128xbf16, #tpu.memory_space<vmem>>, vector<256x128xbf16>
    %c0_3 = arith.constant 0 : index
    %c0_4 = arith.constant 0 : index
    %2 = vector.load %arg4[%c0_3, %c0_4] : memref<256x2xi32, #tpu.memory_space<vmem>>, vector<256x2xi32>
    %3 = vector.extract_strided_slice %2 {offsets = [0, 0], sizes = [256, 1], strides = [1, 1]} : vector<256x2xi32> to vector<256x1xi32>
    %4 = vector.extract_strided_slice %2 {offsets = [0, 1], sizes = [256, 1], strides = [1, 1]} : vector<256x2xi32> to vector<256x1xi32>
    %5 = tpu.iota {dimensions = array<i32: 1>} : vector<256x64xi32>
    %6 = vector.broadcast %3 : vector<256x1xi32> to vector<256x64xi32>
    %7 = arith.cmpi eq, %5, %6 : vector<256x64xi32>
    %8 = arith.extui %7 : vector<256x64xi1> to vector<256x64xi32>
    %9 = arith.sitofp %8 : vector<256x64xi32> to vector<256x64xf32>
    %10 = arith.truncf %9 : vector<256x64xf32> to vector<256x64xbf16>
    %cst = arith.constant dense<0.000000e+00> : vector<256x128xf32>
    %11 = tpu.matmul %10, %0, %cst {dimension_numbers = #tpu.dot_dimension_numbers<[1], [0], [0], [1], [0, 0, 1, 1], [], []>} : vector<256x64xbf16>, vector<64x128xbf16>, vector<256x128xf32> -> vector<256x128xf32>
    %12 = arith.truncf %11 : vector<256x128xf32> to vector<256x128xbf16>
    %c0_5 = arith.constant 0 : index
    %c0_6 = arith.constant 0 : index
    %13 = vector.load %arg5[%c0_5, %c0_6] : memref<128x128xbf16, #tpu.memory_space<vmem>>, vector<128x128xbf16>
    %cst_7 = arith.constant dense<0.000000e+00> : vector<256x128xf32>
    %14 = tpu.matmul %12, %13, %cst_7 {dimension_numbers = #tpu.dot_dimension_numbers<[1], [0], [0], [1], [0, 0, 1, 1], [], []>} : vector<256x128xbf16>, vector<128x128xbf16>, vector<256x128xf32> -> vector<256x128xf32>
    %c0_8 = arith.constant 0 : index
    %c0_9 = arith.constant 0 : index
    %15 = vector.load %arg6[%c0_8, %c0_9] : memref<128x128xbf16, #tpu.memory_space<vmem>>, vector<128x128xbf16>
    %cst_10 = arith.constant dense<0.000000e+00> : vector<256x128xf32>
    %16 = tpu.matmul %1, %15, %cst_10 {dimension_numbers = #tpu.dot_dimension_numbers<[1], [0], [0], [1], [0, 0, 1, 1], [], []>} : vector<256x128xbf16>, vector<128x128xbf16>, vector<256x128xf32> -> vector<256x128xf32>
    %17 = arith.addf %14, %16 : vector<256x128xf32>
    %c0_11 = arith.constant 0 : index
    %c0_12 = arith.constant 0 : index
    %18 = vector.load %arg7[%c0_11, %c0_12] : memref<1x128xf32, #tpu.memory_space<vmem>>, vector<1x128xf32>
    %19 = vector.broadcast %18 : vector<1x128xf32> to vector<256x128xf32>
    %20 = arith.addf %17, %19 : vector<256x128xf32>
    %cst_13 = arith.constant 0.000000e+00 : f32
    %21 = vector.broadcast %cst_13 : f32 to vector<256x128xf32>
    %22 = arith.maximumf %20, %21 : vector<256x128xf32>
    %23 = arith.truncf %22 : vector<256x128xf32> to vector<256x128xbf16>
    %c0_14 = arith.constant 0 : index
    %c0_15 = arith.constant 0 : index
    %24 = vector.load %arg8[%c0_14, %c0_15] : memref<128x128xbf16, #tpu.memory_space<vmem>>, vector<128x128xbf16>
    %cst_16 = arith.constant dense<0.000000e+00> : vector<256x128xf32>
    %25 = tpu.matmul %23, %24, %cst_16 {dimension_numbers = #tpu.dot_dimension_numbers<[1], [0], [0], [1], [0, 0, 1, 1], [], []>} : vector<256x128xbf16>, vector<128x128xbf16>, vector<256x128xf32> -> vector<256x128xf32>
    %c0_17 = arith.constant 0 : index
    %c0_18 = arith.constant 0 : index
    %26 = vector.load %arg9[%c0_17, %c0_18] : memref<1x128xf32, #tpu.memory_space<vmem>>, vector<1x128xf32>
    %27 = vector.broadcast %26 : vector<1x128xf32> to vector<256x128xf32>
    %28 = arith.addf %25, %27 : vector<256x128xf32>
    %cst_19 = arith.constant 0.000000e+00 : f32
    %29 = vector.broadcast %cst_19 : f32 to vector<256x128xf32>
    %30 = arith.maximumf %28, %29 : vector<256x128xf32>
    %31 = arith.truncf %30 : vector<256x128xf32> to vector<256x128xbf16>
    %c0_20 = arith.constant 0 : index
    %c0_21 = arith.constant 0 : index
    %32 = vector.load %arg10[%c0_20, %c0_21] : memref<128x128xbf16, #tpu.memory_space<vmem>>, vector<128x128xbf16>
    %cst_22 = arith.constant dense<0.000000e+00> : vector<256x128xf32>
    %33 = tpu.matmul %31, %32, %cst_22 {dimension_numbers = #tpu.dot_dimension_numbers<[1], [0], [0], [1], [0, 0, 1, 1], [], []>} : vector<256x128xbf16>, vector<128x128xbf16>, vector<256x128xf32> -> vector<256x128xf32>
    %c0_23 = arith.constant 0 : index
    %c0_24 = arith.constant 0 : index
    %34 = vector.load %arg11[%c0_23, %c0_24] : memref<1x128xf32, #tpu.memory_space<vmem>>, vector<1x128xf32>
    %35 = vector.broadcast %34 : vector<1x128xf32> to vector<256x128xf32>
    %36 = arith.addf %33, %35 : vector<256x128xf32>
    %37 = vector.broadcast %4 : vector<256x1xi32> to vector<256x64xi32>
    %38 = arith.cmpi eq, %5, %37 : vector<256x64xi32>
    %39 = arith.extui %38 : vector<256x64xi1> to vector<256x64xi32>
    %40 = arith.sitofp %39 : vector<256x64xi32> to vector<256x64xf32>
    %41 = arith.truncf %40 : vector<256x64xf32> to vector<256x64xbf16>
    %42 = arith.truncf %36 : vector<256x128xf32> to vector<256x128xbf16>
    %cst_25 = arith.constant dense<0.000000e+00> : vector<64x128xf32>
    %43 = tpu.matmul %41, %42, %cst_25 {dimension_numbers = #tpu.dot_dimension_numbers<[0], [0], [1], [1], [0, 1, 1, 1], [], []>} : vector<256x64xbf16>, vector<256x128xbf16>, vector<64x128xf32> -> vector<64x128xf32>
    %c0_i32 = arith.constant 0 : i32
    %44 = arith.cmpi eq, %arg1, %c0_i32 : i32
    %45 = arith.extui %44 : i1 to i32
    %c0_i32_26 = arith.constant 0 : i32
    %46 = arith.cmpi ne, %45, %c0_i32_26 : i32
    scf.if %46 {
      %cst_33 = arith.constant 0.000000e+00 : f32
      %51 = vector.broadcast %cst_33 : f32 to vector<1x64x128xf32>
      %c0_34 = arith.constant 0 : index
      %c0_35 = arith.constant 0 : index
      %c0_36 = arith.constant 0 : index
      %52 = vector.load %arg12[%c0_34, %c0_35, %c0_36] : memref<1x64x128xf32, #tpu.memory_space<vmem>>, vector<1x64x128xf32>
      tpu.vector_store %arg12[%c0_34, %c0_35, %c0_36], %51 {strides = array<i32>} : memref<1x64x128xf32, #tpu.memory_space<vmem>>, vector<1x64x128xf32>,
    } else {
    }
    %c0_27 = arith.constant 0 : index
    %c0_28 = arith.constant 0 : index
    %c0_29 = arith.constant 0 : index
    %47 = vector.load %arg12[%c0_27, %c0_28, %c0_29] : memref<1x64x128xf32, #tpu.memory_space<vmem>>, vector<1x64x128xf32>
    %48 = vector.shape_cast %43 : vector<64x128xf32> to vector<1x64x128xf32>
    %49 = arith.addf %47, %48 : vector<1x64x128xf32>
    %c0_30 = arith.constant 0 : index
    %c0_31 = arith.constant 0 : index
    %c0_32 = arith.constant 0 : index
    %50 = vector.load %arg12[%c0_30, %c0_31, %c0_32] : memref<1x64x128xf32, #tpu.memory_space<vmem>>, vector<1x64x128xf32>
    tpu.vector_store %arg12[%c0_30, %c0_31, %c0_32], %49 {strides = array<i32>} : memref<1x64x128xf32, #tpu.memory_space<vmem>>, vector<1x64x128xf32>,
    return
  }
  func.func @transform_0(%arg0: i32, %arg1: i32) -> (i32, i32) {
    %c0_i32 = arith.constant 0 : i32
    %c0_i32_0 = arith.constant 0 : i32
    %c0_i32_1 = arith.constant 0 : i32
    return %c0_i32, %c0_i32_0 : i32, i32
  }
  func.func @transform_1(%arg0: i32, %arg1: i32) -> (i32, i32) {
    %c1_i32 = arith.constant 1 : i32
    %0 = arith.muli %arg0, %c1_i32 : i32
    %1 = arith.addi %0, %arg1 : i32
    %c0_i32 = arith.constant 0 : i32
    %c0_i32_0 = arith.constant 0 : i32
    return %1, %c0_i32 : i32, i32
  }
  func.func @transform_2(%arg0: i32, %arg1: i32) -> (i32, i32) {
    %c1_i32 = arith.constant 1 : i32
    %0 = arith.muli %arg0, %c1_i32 : i32
    %1 = arith.addi %0, %arg1 : i32
    %c0_i32 = arith.constant 0 : i32
    %c0_i32_0 = arith.constant 0 : i32
    return %1, %c0_i32 : i32, i32
  }
  func.func @transform_3(%arg0: i32, %arg1: i32) -> (i32, i32) {
    %c0_i32 = arith.constant 0 : i32
    %c0_i32_0 = arith.constant 0 : i32
    %c0_i32_1 = arith.constant 0 : i32
    return %c0_i32, %c0_i32_0 : i32, i32
  }
  func.func @transform_4(%arg0: i32, %arg1: i32) -> (i32, i32) {
    %c0_i32 = arith.constant 0 : i32
    %c0_i32_0 = arith.constant 0 : i32
    %c0_i32_1 = arith.constant 0 : i32
    return %c0_i32, %c0_i32_0 : i32, i32
  }
  func.func @transform_5(%arg0: i32, %arg1: i32) -> (i32, i32) {
    %c0_i32 = arith.constant 0 : i32
    %c0_i32_0 = arith.constant 0 : i32
    %c0_i32_1 = arith.constant 0 : i32
    return %c0_i32, %c0_i32_0 : i32, i32
  }
  func.func @transform_6(%arg0: i32, %arg1: i32) -> (i32, i32) {
    %c0_i32 = arith.constant 0 : i32
    %c0_i32_0 = arith.constant 0 : i32
    %c0_i32_1 = arith.constant 0 : i32
    return %c0_i32, %c0_i32_0 : i32, i32
  }
  func.func @transform_7(%arg0: i32, %arg1: i32) -> (i32, i32) {
    %c0_i32 = arith.constant 0 : i32
    %c0_i32_0 = arith.constant 0 : i32
    %c0_i32_1 = arith.constant 0 : i32
    return %c0_i32, %c0_i32_0 : i32, i32
  }
  func.func @transform_8(%arg0: i32, %arg1: i32) -> (i32, i32) {
    %c0_i32 = arith.constant 0 : i32
    %c0_i32_0 = arith.constant 0 : i32
    %c0_i32_1 = arith.constant 0 : i32
    return %c0_i32, %c0_i32_0 : i32, i32
  }
  func.func @transform_9(%arg0: i32, %arg1: i32) -> (i32, i32) {
    %c0_i32 = arith.constant 0 : i32
    %c0_i32_0 = arith.constant 0 : i32
    %c0_i32_1 = arith.constant 0 : i32
    return %c0_i32, %c0_i32_0 : i32, i32
  }
  func.func @transform_10(%arg0: i32, %arg1: i32) -> (i32, i32, i32) {
    %c0_i32 = arith.constant 0 : i32
    %c0_i32_0 = arith.constant 0 : i32
    %c0_i32_1 = arith.constant 0 : i32
    return %arg0, %c0_i32, %c0_i32_0 : i32, i32, i32
  }
}

</mosaic_0001>

<bundles_post_ra>
// kernel: tpu_custom_call.1
= control target key start
LH: loop header
LB: loop body
LE: loop exit
PB: predicated region body
PF: predicated region fallthrough
CT: control target
= control target key end

     0   :  { %15 = vsyncpa [#allocation3], 0  ;;  %s3622_s0 = inlined_call_operand.hbm [shape: bf16[64,128], index: 0, kind: input, shape index: {}]   ;;  %s3623_s1 = inlined_call_operand.vmem [shape: bf16[256,128], index: 1, kind: input, shape index: {}]   ;;  %s3624_s2 = inlined_call_operand.vmem [shape: s32[256,2], index: 2, kind: input, shape index: {}]   ;;  %s3625_s3 = inlined_call_operand.vmem [shape: bf16[128,128], index: 3, kind: input, shape index: {}]   ;;  %s3626_s4 = inlined_call_operand.vmem [shape: bf16[128,128], index: 4, kind: input, shape index: {}]   ;;  %s3627_s5 = inlined_call_operand.vmem [shape: f32[1,128], index: 5, kind: input, shape index: {}]   ;;  %s3628_s6 = inlined_call_operand.hbm [shape: bf16[128,128], index: 6, kind: input, shape index: {}]   ;;  %s3629_s7 = inlined_call_operand.vmem [shape: f32[1,128], index: 7, kind: input, shape index: {}]   ;;  %s3630_s8 = inlined_call_operand.hbm [shape: bf16[128,128], index: 8, kind: input, shape index: {}]   ;;  %s3631_s9 = inlined_call_operand.vmem [shape: f32[1,128], index: 9, kind: input, shape index: {}]   ;;  %s3632_s10 = inlined_call_operand.hbm [shape: f32[1,64,128], index: 10, kind: output, shape index: {}]  }
   0x1   :  { %16 = vsyncpa [#allocation6], 0 }
   0x2   :  { %17 = vsyncpa [#allocation4], 0  ;;  %s2902_s13 = smov [#allocation5]   ;;  %s2903_s15 = smov [#allocation2]  }
   0x3   :  { %s61_s14 = sshll.u32 %s2902_s13, 4  ;;  %s23_s16 = sshll.u32 %s2903_s15, 4  ;;  %s62_s14 = int_to_ptr.vmem [resolvable:$true] %s61_s14  ;;  %s2968_s16 = int_to_ptr.vmem [resolvable:$true] %s23_s16 }
   0x4   :  { %s2808_s19 = scalar_lea.hbm %s3628_s6, 1024 }
   0x5   :  { %p2809_p0 = scmp.ne.s32.totalorder %s3628_s6, %s2808_s19  ;;  %p2812_p1 = scmp.lt.u32.totalorder %s2808_s19, %s3628_s6 }
   0x7   :  { %p2814_p2 = pnand %p2812_p1, %p2809_p0 }
   0x9   :  { %2817 = shalt.err (!%p2814_p2)
}
   0xa   :  { %s2818_s24 = scalar_lea.vmem %s62_s14, 1024  ;;  %p2823_p4 = scmp.lt.s32.totalorder %s62_s14, %s62_s14 }
   0xb   :  { %p2819_p3 = scmp.ne.s32.totalorder %s62_s14, %s2818_s24  ;;  %p2824_p5 = scmp.lt.s32.totalorder %s2818_s24, %s2818_s24 }
   0xd   :  { %p2825_p6 = por %p2824_p5, %p2823_p4 }
   0xf   :  { %p2826_p7 = pnand %p2825_p6, %p2819_p3 }
  0x11   :  { %2829 = shalt.err (!%p2826_p7)
}
  0x12   :  { %s2904_s25 = smov 64   ;;  %s2905_s26 = smov 4  }
  0x13   :  { %67 = dma.hbm_to_vmem [thread:$0]  %s3628_s6, 1024, %s62_s14, [#allocation6], %s2904_s25, %s2904_s25, %s2905_s26  }
  0x14   :  { %s2830_s11 = scalar_lea.hbm %s3622_s0, 512 }
  0x15   :  { %p2831_p8 = scmp.ne.s32.totalorder %s3622_s0, %s2830_s11  ;;  %p2834_p9 = scmp.lt.u32.totalorder %s2830_s11, %s3622_s0 }
  0x17   :  { %p2836_p10 = pnand %p2834_p9, %p2831_p8 }
  0x19   :  { %2839 = shalt.err (!%p2836_p10)
}
  0x1a   :  { %s2840_s18 = scalar_lea.vmem %s2968_s16, 512  ;;  %p2845_p12 = scmp.lt.s32.totalorder %s2968_s16, %s2968_s16 }
  0x1b   :  { %p2841_p11 = scmp.ne.s32.totalorder %s2968_s16, %s2840_s18  ;;  %p2846_p13 = scmp.lt.s32.totalorder %s2840_s18, %s2840_s18 }
  0x1d   :  { %p2847_p0 = por %p2846_p13, %p2845_p12 }
  0x1f   :  { %p2848_p1 = pnand %p2847_p0, %p2841_p11 }
  0x21   :  { %2851 = shalt.err (!%p2848_p1)
}
  0x22   :  { %29 = dma.hbm_to_vmem [thread:$0]  %s3622_s0, 512, %s2968_s16, [#allocation3], %s2904_s25, %s2904_s25, %s2905_s26  }
  0x23   :  { %s2906_s19 = smov [#allocation7]   ;;  %s2852_s23 = scalar_lea.hbm %s3630_s8, 1024 }
  0x24   :  { %s75_s20 = sshll.u32 %s2906_s19, 4  ;;  %p2853_p2 = scmp.ne.s32.totalorder %s3630_s8, %s2852_s23  ;;  %s76_s20 = int_to_ptr.vmem [resolvable:$true] %s75_s20 }
  0x25   :  { %p2856_p3 = scmp.lt.u32.totalorder %s2852_s23, %s3630_s8 }
  0x27   :  { %p2858_p4 = pnand %p2856_p3, %p2853_p2 }
  0x29   :  { %2861 = shalt.err (!%p2858_p4)
}
  0x2a   :  { %s2862_s30 = scalar_lea.vmem %s76_s20, 1024  ;;  %p2867_p6 = scmp.lt.s32.totalorder %s76_s20, %s76_s20 }
  0x2b   :  { %p2863_p5 = scmp.ne.s32.totalorder %s76_s20, %s2862_s30  ;;  %p2868_p7 = scmp.lt.s32.totalorder %s2862_s30, %s2862_s30 }
  0x2d   :  { %p2869_p8 = por %p2868_p7, %p2867_p6 }
  0x2f   :  { %p2870_p9 = pnand %p2869_p8, %p2863_p5 }
  0x31   :  { %2873 = shalt.err (!%p2870_p9)
}
  0x32   :  { %81 = dma.hbm_to_vmem [thread:$0]  %s3630_s8, 1024, %s76_s20, [#allocation6], %s2904_s25, %s2904_s25, %s2905_s26  }
  0x33   :  { %2896 = dma.done.wait [#allocation3], 512  }
  0x34   :  { %2897 = vsyncadd [#allocation3], 4294966784 }
  0x35   :  { %2898 = dma.done.wait [#allocation6], 2048  }
  0x36   :  { %2899 = vsyncadd [#allocation6], 4294965248  ;;  %v2907_v0 = vmov 0   ;;  %v3023_v1 = vld [vmem:[%s3624_s2 + $0x10] sm:$0xff]  ;;  %v3028_v2 = vld [vmem:[%s3624_s2] sm:$0xff]  ;;  %v194_v61 = vlaneseq  ;;  %vm428_vm4 = vcmask 523264  }
  0x37   :  { %2753 = vset.pattern.permute.xlu1 %v2907_v0  ;;  %2752 = vset.pattern.permute.xlu0 %v2907_v0  ;;  %v3035_v3 = vld [vmem:[%s3624_s2 + $0x18] sm:$0xff]  ;;  %v3040_v4 = vld [vmem:[%s3624_s2 + $0x8] sm:$0xff]  ;;  %v3052_v6 = vld [vmem:[%s3624_s2 + $0x20] sm:$0xff] }
  0x38   :  { %203 = vperm.xlu1 %2753, %v3023_v1   ;;  %197 = vperm.xlu0 %2752, %v3028_v2   ;;  %v3047_v5 = vld [vmem:[%s3624_s2 + $0x28] sm:$0xff]  ;;  %v3059_v7 = vld [vmem:[%s3624_s2 + $0x38] sm:$0xff]  ;;  %v3064_v8 = vld [vmem:[%s3624_s2 + $0x30] sm:$0xff]  ;;  %v3284_v62 = vand.u32 127, %v194_v61 }
  0x39   :  { %v2756_v9 = vld [vmem:[#allocation2] sm:$0xff]   ;;  %v3069_v10 = vld [vmem:[%s3624_s2 + $0x48] sm:$0xff]  ;;  %v2758_v13 = vld [vmem:[#allocation2 + $0x10] sm:$0xff]  }
  0x3a   :  { %v2757_v11 = vld [vmem:[#allocation2 + $0x8] sm:$0xff]   ;;  %v3076_v12 = vld [vmem:[%s3624_s2 + $0x40] sm:$0xff]  ;;  %2477 = vmatprep.subr.bf16.mxu0 %v2756_v9  ;;  %v3081_v14 = vld [vmem:[%s3624_s2 + $0x58] sm:$0xff] }
  0x3b   :  { %2478 = vmatpush3.bf16.msra.mxu0 %v2756_v9  ;;  %v3086_v15 = vld [vmem:[%s3624_s2 + $0x50] sm:$0xff]  ;;  %v2759_v16 = vld [vmem:[#allocation2 + $0x18] sm:$0xff]   ;;  %v3093_v17 = vld [vmem:[%s3624_s2 + $0x68] sm:$0xff] }
  0x3c   :  { %206 = vperm.xlu1 %2753, %v3035_v3   ;;  %200 = vperm.xlu0 %2752, %v3040_v4   ;;  %v3098_v18 = vld [vmem:[%s3624_s2 + $0x60] sm:$0xff]  ;;  %v3105_v19 = vld [vmem:[%s3624_s2 + $0x78] sm:$0xff]  ;;  %v3110_v20 = vld [vmem:[%s3624_s2 + $0x70] sm:$0xff] }
  0x3d   :  { %2479 = vmatprep.subr.bf16.mxu0 %v2757_v11  ;;  %v3117_v21 = vld [vmem:[%s3624_s2 + $0x88] sm:$0xff]  ;;  %v3122_v22 = vld [vmem:[%s3624_s2 + $0x80] sm:$0xff]  ;;  %v3129_v23 = vld [vmem:[%s3624_s2 + $0x98] sm:$0xff] }
  0x3e   :  { %v3134_v24 = vld [vmem:[%s3624_s2 + $0x90] sm:$0xff]  ;;  %v3141_v25 = vld [vmem:[%s3624_s2 + $0xa8] sm:$0xff]  ;;  %v3146_v26 = vld [vmem:[%s3624_s2 + $0xa0] sm:$0xff] }
  0x3f   :  { %2480 = vmatpush3.bf16.msra.mxu0 %v2757_v11  ;;  %v3153_v27 = vld [vmem:[%s3624_s2 + $0xb8] sm:$0xff]  ;;  %v3158_v28 = vld [vmem:[%s3624_s2 + $0xb0] sm:$0xff]  ;;  %v3165_v29 = vld [vmem:[%s3624_s2 + $0xc8] sm:$0xff] }
  0x40   :  { %212 = vperm.xlu1 %2753, %v3047_v5   ;;  %209 = vperm.xlu0 %2752, %v3052_v6   ;;  %v3172_v30 = vld [vmem:[%s3624_s2 + $0xc0] sm:$0xff]  ;;  %v3179_v31 = vld [vmem:[%s3624_s2 + $0xd8] sm:$0xff]  ;;  %v3184_v32 = vld [vmem:[%s3624_s2 + $0xd0] sm:$0xff] }
  0x41   :  { %2481 = vmatprep.subr.bf16.mxu0 %v2758_v13  ;;  %v3191_v33 = vld [vmem:[%s3624_s2 + $0xe8] sm:$0xff]  ;;  %v3196_v34 = vld [vmem:[%s3624_s2 + $0xe0] sm:$0xff]  ;;  %v3203_v35 = vld [vmem:[%s3624_s2 + $0xf8] sm:$0xff] }
  0x42   :  { %v3208_v36 = vld [vmem:[%s3624_s2 + $0xf0] sm:$0xff]  ;;  %v2760_v37 = vld [vmem:[%s3626_s4] sm:$0xff]   ;;  %v2761_v38 = vld [vmem:[%s3626_s4 + $0x8] sm:$0xff]  }
  0x43   :  { %2482 = vmatpush3.bf16.msra.mxu0 %v2758_v13  ;;  %2517 = vmatprep.subr.bf16.mxu1 %v2760_v37  ;;  %v2768_v39 = vld [vmem:[%s3623_s1] sm:$0xff]   ;;  %v2762_v40 = vld [vmem:[%s3626_s4 + $0x10] sm:$0xff]   ;;  %v2763_v41 = vld [vmem:[%s3626_s4 + $0x18] sm:$0xff]  }
  0x44   :  { %218 = vperm.xlu1 %2753, %v3059_v7   ;;  %215 = vperm.xlu0 %2752, %v3064_v8   ;;  %v2764_v42 = vld [vmem:[%s3626_s4 + $0x20] sm:$0xff]   ;;  %v2765_v43 = vld [vmem:[%s3626_s4 + $0x28] sm:$0xff]   ;;  %v2766_v44 = vld [vmem:[%s3626_s4 + $0x30] sm:$0xff]  }
  0x45   :  { %2483 = vmatprep.subr.bf16.mxu0 %v2759_v16  ;;  %2518 = vmatpush3.bf16.msra.mxu1 %v2760_v37  ;;  %v2767_v45 = vld [vmem:[%s3626_s4 + $0x38] sm:$0xff]   ;;  %v2778_v46 = vld [vmem:[%s3625_s3] sm:$0xff]   ;;  %v2769_v47 = vld [vmem:[%s3623_s1 + $0x8] sm:$0xff]   ;;  %v2908_v37 = vmov 0.0  }
  0x46   :  { %2519 = vmatprep.subr.bf16.mxu1 %v2761_v38  ;;  %2533 = vmatprep.mubr.bf16.mxu1 %v2768_v39  ;;  %v2770_v48 = vld [vmem:[%s3623_s1 + $0x10] sm:$0xff]   ;;  %v2779_v49 = vld [vmem:[%s3625_s3 + $0x8] sm:$0xff]   ;;  %v2771_v51 = vld [vmem:[%s3623_s1 + $0x18] sm:$0xff]  }
  0x47   :  { %2484 = vmatpush3.bf16.msra.mxu0 %v2759_v16  ;;  %v2782_v50 = vld [vmem:[%s3625_s3 + $0x10] sm:$0xff]   ;;  %v2772_v52 = vld [vmem:[%s3623_s1 + $0x20] sm:$0xff]   ;;  %v2783_v53 = vld [vmem:[%s3625_s3 + $0x18] sm:$0xff]  }
  0x48   :  { %224 = vperm.xlu1 %2753, %v3069_v10   ;;  %221 = vperm.xlu0 %2752, %v3076_v12   ;;  %v2786_v54 = vld [vmem:[%s3625_s3 + $0x20] sm:$0xff]   ;;  %v2773_v55 = vld [vmem:[%s3623_s1 + $0x28] sm:$0xff]   ;;  %v2774_v56 = vld [vmem:[%s3623_s1 + $0x30] sm:$0xff]  }
  0x49   :  { %2520 = vmatpush3.bf16.msra.mxu1 %v2761_v38  ;;  %v2787_v57 = vld [vmem:[%s3625_s3 + $0x28] sm:$0xff]   ;;  %v2790_v58 = vld [vmem:[%s3625_s3 + $0x30] sm:$0xff]   ;;  %v2775_v59 = vld [vmem:[%s3623_s1 + $0x38] sm:$0xff]  }
  0x4a   :  { %2521 = vmatprep.subr.bf16.mxu1 %v2762_v40  ;;  %v2776_v60 = vld [vmem:[%s3623_s1 + $0x40] sm:$0xff]   ;;  %v2777_v9 = vld [vmem:[%s3623_s1 + $0x48] sm:$0xff]   ;;  %v2780_v11 = vld [vmem:[%s3623_s1 + $0x50] sm:$0xff]  }
  0x4c   :  { %230 = vperm.xlu1 %2753, %v3081_v14   ;;  %227 = vperm.xlu0 %2752, %v3086_v15  }
  0x4d   :  { %2522 = vmatpush3.bf16.msra.mxu1 %v2762_v40 }
  0x4e   :  { %2523 = vmatprep.subr.bf16.mxu1 %v2763_v41 }
  0x50   :  { %236 = vperm.xlu1 %2753, %v3093_v17   ;;  %233 = vperm.xlu0 %2752, %v3098_v18  }
  0x51   :  { %2524 = vmatpush3.bf16.msra.mxu1 %v2763_v41 }
  0x52   :  { %2525 = vmatprep.subr.bf16.mxu1 %v2764_v42 }
  0x54   :  { %242 = vperm.xlu1 %2753, %v3105_v19   ;;  %239 = vperm.xlu0 %2752, %v3110_v20  }
  0x55   :  { %2526 = vmatpush3.bf16.msra.mxu1 %v2764_v42 }
  0x56   :  { %2527 = vmatprep.subr.bf16.mxu1 %v2765_v43 }
  0x58   :  { %248 = vperm.xlu1 %2753, %v3117_v21   ;;  %245 = vperm.xlu0 %2752, %v3122_v22  }
  0x59   :  { %2528 = vmatpush3.bf16.msra.mxu1 %v2765_v43 }
  0x5a   :  { %2529 = vmatprep.subr.bf16.mxu1 %v2766_v44 }
  0x5c   :  { %254 = vperm.xlu1 %2753, %v3129_v23   ;;  %251 = vperm.xlu0 %2752, %v3134_v24  }
  0x5d   :  { %2530 = vmatpush3.bf16.msra.mxu1 %v2766_v44 }
  0x5e   :  { %2531 = vmatprep.subr.bf16.mxu1 %v2767_v45 }
  0x60   :  { %260 = vperm.xlu1 %2753, %v3141_v25   ;;  %257 = vperm.xlu0 %2752, %v3146_v26  }
  0x61   :  { %2532 = vmatpush3.bf16.msra.mxu1 %v2767_v45 }
  0x62   :  { %2565 = vmatprep.subr.bf16.mxu1 %v2778_v46 }
  0x64   :  { %266 = vperm.xlu1 %2753, %v3153_v27   ;;  %263 = vperm.xlu0 %2752, %v3158_v28  }
  0x65   :  { %2534 = vmatmul.mubr.bf16.vlgmr.msra.gmra.mrb[0].mxu1 %v2769_v47  ;;  %v2784_v47 = vld [vmem:[%s3623_s1 + $0x60] sm:$0xff]  }
  0x66   :  { %2537 = vmatprep.mubr.bf16.mxu1 %v2770_v48  ;;  %2566 = vmatpush3.bf16.msra.mxu1 %v2778_v46  ;;  %v2781_v46 = vld [vmem:[%s3623_s1 + $0x58] sm:$0xff]  }
  0x67   :  { %2567 = vmatprep.subr.bf16.mxu1 %v2779_v49 }
  0x68   :  { %272 = vperm.xlu1 %2753, %v3165_v29   ;;  %269 = vperm.xlu0 %2752, %v3172_v30  }
  0x6a   :  { %2568 = vmatpush3.bf16.msra.mxu1 %v2779_v49 }
  0x6b   :  { %2569 = vmatprep.subr.bf16.mxu1 %v2782_v50 }
  0x6c   :  { %278 = vperm.xlu1 %2753, %v3179_v31   ;;  %275 = vperm.xlu0 %2752, %v3184_v32  }
  0x6d   :  { %2538 = vmatmul.mubr.bf16.gmra.mrb[4].mxu1 %v2771_v51 }
  0x6e   :  { %2541 = vmatprep.mubr.bf16.mxu1 %v2772_v52  ;;  %2570 = vmatpush3.bf16.msra.mxu1 %v2782_v50 }
  0x6f   :  { %2571 = vmatprep.subr.bf16.mxu1 %v2783_v53 }
  0x70   :  { %284 = vperm.xlu1 %2753, %v3191_v33   ;;  %281 = vperm.xlu0 %2752, %v3196_v34  }
  0x72   :  { %2572 = vmatpush3.bf16.msra.mxu1 %v2783_v53 }
  0x73   :  { %2573 = vmatprep.subr.bf16.mxu1 %v2786_v54 }
  0x74   :  { %290 = vperm.xlu1 %2753, %v3203_v35   ;;  %287 = vperm.xlu0 %2752, %v3208_v36  }
  0x75   :  { %2542 = vmatmul.mubr.bf16.gmra.mrb[8].mxu1 %v2773_v55 }
  0x76   :  { %2545 = vmatprep.mubr.bf16.mxu1 %v2774_v56  ;;  %2574 = vmatpush3.bf16.msra.mxu1 %v2786_v54 }
  0x77   :  { %2575 = vmatprep.subr.bf16.mxu1 %v2787_v57 }
  0x7a   :  { %2576 = vmatpush3.bf16.msra.mxu1 %v2787_v57 }
  0x7b   :  { %2577 = vmatprep.subr.bf16.mxu1 %v2790_v58 }
  0x7d   :  { %2546 = vmatmul.mubr.bf16.gmra.mrb[12].mxu1 %v2775_v59  ;;  %v2788_v59 = vld [vmem:[%s3623_s1 + $0x70] sm:$0xff]  }
  0x7e   :  { %2549 = vmatprep.mubr.bf16.mxu1 %v2776_v60  ;;  %2578 = vmatpush3.bf16.msra.mxu1 %v2790_v58  ;;  %v2785_v58 = vld [vmem:[%s3623_s1 + $0x68] sm:$0xff]  }
  0x85   :  { %2550 = vmatmul.mubr.bf16.gmra.mrb[16].mxu1 %v2777_v9 }
  0x86   :  { %2553 = vmatprep.mubr.bf16.mxu1 %v2780_v11 }
  0x8d   :  { %2554 = vmatmul.mubr.bf16.gmra.mrb[20].mxu1 %v2781_v46 }
  0x8e   :  { %2557 = vmatprep.mubr.bf16.mxu1 %v2784_v47 }
  0x95   :  { %2558 = vmatmul.mubr.bf16.gmra.mrb[24].mxu1 %v2785_v58 }
  0x96   :  { %2561 = vmatprep.mubr.bf16.mxu1 %v2788_v59 }
  0xb7   :  { %v204_v63 = vpop.permute.xlu1 %203  ;;  %v198_v0 = vpop.permute.xlu0 %197 }
  0xb8   :  { %vm294_vm0 = vcmp.eq.s32.totalorder %v3284_v62, %v204_v63  ;;  %vm292_vm1 = vcmp.eq.s32.totalorder %v3284_v62, %v198_v0 }
  0xb9   :  { %v2188_v38 = vsel %vm294_vm0, 1.0, %v2908_v37  ;;  %v2186_v39 = vsel %vm292_vm1, 1.0, %v2908_v37 }
  0xbb   :  { %v207_v13 = vpop.permute.xlu1 %206  ;;  %v201_v16 = vpop.permute.xlu0 %200 }
  0xbc   :  { %vm295_vm2 = vcmp.eq.s32.totalorder %v3284_v62, %v207_v13  ;;  %vm293_vm3 = vcmp.eq.s32.totalorder %v3284_v62, %v201_v16 }
  0xbd   :  { %v2189_v40 = vsel %vm295_vm2, 1.0, %v2908_v37  ;;  %v2187_v41 = vsel %vm293_vm3, 1.0, %v2908_v37 }
  0xbe   :  { %v389_v42 = vpack.c.bf16 %v2189_v40, %v2188_v38  ;;  %v388_v43 = vpack.c.bf16 %v2187_v41, %v2186_v39  ;;  %v2789_v40 = vld [vmem:[%s3623_s1 + $0x78] sm:$0xff]  }
  0xbf   :  { %v213_v44 = vpop.permute.xlu1 %212  ;;  %v210_v45 = vpop.permute.xlu0 %209  ;;  %2562 = vmatmul.mubr.bf16.gmra.mrb[28].mxu1 %v2789_v40 }
  0xc0   :  { %vm297_vm5 = vcmp.eq.s32.totalorder %v3284_v62, %v213_v44  ;;  %vm296_vm6 = vcmp.eq.s32.totalorder %v3284_v62, %v210_v45  ;;  %2485 = vmatprep.mubr.msk.bf16.mxu0 %vm428_vm4, %v388_v43 }
  0xc1   :  { %v2191_v48 = vsel %vm297_vm5, 1.0, %v2908_v37  ;;  %v2190_v49 = vsel %vm296_vm6, 1.0, %v2908_v37  ;;  %2486 = vmatmul.mubr.msk.bf16.vlgmr.msra.gmra.mrb[0].mxu0 %vm428_vm4, %v389_v42 }
  0xc2   :  { %v390_v50 = vpack.c.bf16 %v2191_v48, %v2190_v49 }
  0xc3   :  { %v219_v51 = vpop.permute.xlu1 %218  ;;  %v216_v52 = vpop.permute.xlu0 %215 }
  0xc4   :  { %vm299_vm7 = vcmp.eq.s32.totalorder %v3284_v62, %v219_v51  ;;  %vm298_vm8 = vcmp.eq.s32.totalorder %v3284_v62, %v216_v52  ;;  %2489 = vmatprep.mubr.msk.bf16.mxu0 %vm428_vm4, %v390_v50 }
  0xc5   :  { %v2193_v53 = vsel %vm299_vm7, 1.0, %v2908_v37  ;;  %v2192_v54 = vsel %vm298_vm8, 1.0, %v2908_v37 }
  0xc6   :  { %v391_v55 = vpack.c.bf16 %v2193_v53, %v2192_v54 }
  0xc7   :  { %v225_v56 = vpop.permute.xlu1 %224  ;;  %v222_v57 = vpop.permute.xlu0 %221 }
  0xc8   :  { %vm301_vm9 = vcmp.eq.s32.totalorder %v3284_v62, %v225_v56  ;;  %vm300_vm10 = vcmp.eq.s32.totalorder %v3284_v62, %v222_v57 }
  0xc9   :  { %v2195_v60 = vsel %vm301_vm9, 1.0, %v2908_v37  ;;  %v2194_v61 = vsel %vm300_vm10, 1.0, %v2908_v37  ;;  %2490 = vmatmul.mubr.msk.bf16.gmra.mrb[4].mxu0 %vm428_vm4, %v391_v55 }
  0xca   :  { %v392_v63 = vpack.c.bf16 %v2195_v60, %v2194_v61 }
  0xcb   :  { %v231_v0 = vpop.permute.xlu1 %230  ;;  %v228_v9 = vpop.permute.xlu0 %227 }
  0xcc   :  { %vm303_vm11 = vcmp.eq.s32.totalorder %v3284_v62, %v231_v0  ;;  %vm302_vm12 = vcmp.eq.s32.totalorder %v3284_v62, %v228_v9  ;;  %2493 = vmatprep.mubr.msk.bf16.mxu0 %vm428_vm4, %v392_v63 }
  0xcd   :  { %v2197_v11 = vsel %vm303_vm11, 1.0, %v2908_v37  ;;  %v2196_v13 = vsel %vm302_vm12, 1.0, %v2908_v37 }
  0xce   :  { %v393_v16 = vpack.c.bf16 %v2197_v11, %v2196_v13 }
  0xcf   :  { %v237_v38 = vpop.permute.xlu1 %236  ;;  %v234_v39 = vpop.permute.xlu0 %233 }
  0xd0   :  { %vm305_vm13 = vcmp.eq.s32.totalorder %v3284_v62, %v237_v38  ;;  %vm304_vm14 = vcmp.eq.s32.totalorder %v3284_v62, %v234_v39 }
  0xd1   :  { %v2199_v41 = vsel %vm305_vm13, 1.0, %v2908_v37  ;;  %v2198_v42 = vsel %vm304_vm14, 1.0, %v2908_v37  ;;  %2494 = vmatmul.mubr.msk.bf16.gmra.mrb[8].mxu0 %vm428_vm4, %v393_v16 }
  0xd2   :  { %v394_v43 = vpack.c.bf16 %v2199_v41, %v2198_v42 }
  0xd3   :  { %v243_v44 = vpop.permute.xlu1 %242  ;;  %v240_v45 = vpop.permute.xlu0 %239 }
  0xd4   :  { %vm307_vm15 = vcmp.eq.s32.totalorder %v3284_v62, %v243_v44  ;;  %vm306_vm0 = vcmp.eq.s32.totalorder %v3284_v62, %v240_v45  ;;  %2497 = vmatprep.mubr.msk.bf16.mxu0 %vm428_vm4, %v394_v43 }
  0xd5   :  { %v2201_v46 = vsel %vm307_vm15, 1.0, %v2908_v37  ;;  %v2200_v47 = vsel %vm306_vm0, 1.0, %v2908_v37 }
  0xd6   :  { %v395_v48 = vpack.c.bf16 %v2201_v46, %v2200_v47 }
  0xd7   :  { %v249_v49 = vpop.permute.xlu1 %248  ;;  %v246_v50 = vpop.permute.xlu0 %245 }
  0xd8   :  { %vm309_vm1 = vcmp.eq.s32.totalorder %v3284_v62, %v249_v49  ;;  %vm308_vm2 = vcmp.eq.s32.totalorder %v3284_v62, %v246_v50 }
  0xd9   :  { %v2203_v51 = vsel %vm309_vm1, 1.0, %v2908_v37  ;;  %v2202_v52 = vsel %vm308_vm2, 1.0, %v2908_v37  ;;  %2498 = vmatmul.mubr.msk.bf16.gmra.mrb[12].mxu0 %vm428_vm4, %v395_v48 }
  0xda   :  { %v396_v53 = vpack.c.bf16 %v2203_v51, %v2202_v52 }
  0xdb   :  { %v255_v54 = vpop.permute.xlu1 %254  ;;  %v252_v55 = vpop.permute.xlu0 %251 }
  0xdc   :  { %vm311_vm3 = vcmp.eq.s32.totalorder %v3284_v62, %v255_v54  ;;  %vm310_vm5 = vcmp.eq.s32.totalorder %v3284_v62, %v252_v55  ;;  %2501 = vmatprep.mubr.msk.bf16.mxu0 %vm428_vm4, %v396_v53 }
  0xdd   :  { %v2205_v56 = vsel %vm311_vm3, 1.0, %v2908_v37  ;;  %v2204_v57 = vsel %vm310_vm5, 1.0, %v2908_v37 }
  0xde   :  { %v397_v58 = vpack.c.bf16 %v2205_v56, %v2204_v57 }
  0xdf   :  { %v261_v59 = vpop.permute.xlu1 %260  ;;  %v258_v60 = vpop.permute.xlu0 %257 }
  0xe0   :  { %vm313_vm6 = vcmp.eq.s32.totalorder %v3284_v62, %v261_v59  ;;  %vm312_vm7 = vcmp.eq.s32.totalorder %v3284_v62, %v258_v60  ;;  %v2791_v59 = vld [vmem:[%s3625_s3 + $0x38] sm:$0xff]   ;;  %v2792_v60 = vld [vmem:[#allocation5] sm:$0xff]  }
  0xe1   :  { %v2207_v61 = vsel %vm313_vm6, 1.0, %v2908_v37  ;;  %v2206_v63 = vsel %vm312_vm7, 1.0, %v2908_v37  ;;  %2502 = vmatmul.mubr.msk.bf16.gmra.mrb[16].mxu0 %vm428_vm4, %v397_v58  ;;  %2579 = vmatprep.subr.bf16.mxu1 %v2791_v59 }
  0xe2   :  { %v398_v0 = vpack.c.bf16 %v2207_v61, %v2206_v63  ;;  %2580 = vmatpush3.bf16.msra.mxu1 %v2791_v59  ;;  %v2793_v61 = vld [vmem:[#allocation5 + $0x8] sm:$0xff]   ;;  %2613 = vmatprep.subr.bf16.mxu0 %v2792_v60  ;;  %v2794_v63 = vld [vmem:[#allocation5 + $0x10] sm:$0xff]  }
  0xe3   :  { %v267_v9 = vpop.permute.xlu1 %266  ;;  %v264_v11 = vpop.permute.xlu0 %263  ;;  %2614 = vmatpush3.bf16.msra.mxu0 %v2792_v60 }
  0xe4   :  { %vm315_vm8 = vcmp.eq.s32.totalorder %v3284_v62, %v267_v9  ;;  %vm314_vm9 = vcmp.eq.s32.totalorder %v3284_v62, %v264_v11  ;;  %2505 = vmatprep.mubr.msk.bf16.mxu0 %vm428_vm4, %v398_v0  ;;  %2615 = vmatprep.subr.bf16.mxu0 %v2793_v61  ;;  %v2795_v0 = vld [vmem:[#allocation5 + $0x18] sm:$0xff]   ;;  %v2796_v9 = vld [vmem:[#allocation5 + $0x20] sm:$0xff]   ;;  %v2797_v11 = vld [vmem:[#allocation5 + $0x28] sm:$0xff]  }
  0xe5   :  { %v2209_v13 = vsel %vm315_vm8, 1.0, %v2908_v37  ;;  %v2208_v16 = vsel %vm314_vm9, 1.0, %v2908_v37 }
  0xe6   :  { %v399_v38 = vpack.c.bf16 %v2209_v13, %v2208_v16 }
  0xe7   :  { %v273_v39 = vpop.permute.xlu1 %272  ;;  %v270_v40 = vpop.permute.xlu0 %269  ;;  %2616 = vmatpush3.bf16.msra.mxu0 %v2793_v61 }
  0xe8   :  { %vm317_vm10 = vcmp.eq.s32.totalorder %v3284_v62, %v273_v39  ;;  %vm316_vm11 = vcmp.eq.s32.totalorder %v3284_v62, %v270_v40  ;;  %2617 = vmatprep.subr.bf16.mxu0 %v2794_v63 }
  0xe9   :  { %v2211_v41 = vsel %vm317_vm10, 1.0, %v2908_v37  ;;  %v2210_v42 = vsel %vm316_vm11, 1.0, %v2908_v37  ;;  %2506 = vmatmul.mubr.msk.bf16.gmra.mrb[20].mxu0 %vm428_vm4, %v399_v38 }
  0xea   :  { %v400_v43 = vpack.c.bf16 %v2211_v41, %v2210_v42 }
  0xeb   :  { %v279_v44 = vpop.permute.xlu1 %278  ;;  %v276_v45 = vpop.permute.xlu0 %275  ;;  %2618 = vmatpush3.bf16.msra.mxu0 %v2794_v63 }
  0xec   :  { %vm319_vm12 = vcmp.eq.s32.totalorder %v3284_v62, %v279_v44  ;;  %vm318_vm13 = vcmp.eq.s32.totalorder %v3284_v62, %v276_v45  ;;  %2509 = vmatprep.mubr.msk.bf16.mxu0 %vm428_vm4, %v400_v43  ;;  %2619 = vmatprep.subr.bf16.mxu0 %v2795_v0 }
  0xed   :  { %v2213_v46 = vsel %vm319_vm12, 1.0, %v2908_v37  ;;  %v2212_v47 = vsel %vm318_vm13, 1.0, %v2908_v37 }
  0xee   :  { %v401_v48 = vpack.c.bf16 %v2213_v46, %v2212_v47 }
  0xef   :  { %v285_v49 = vpop.permute.xlu1 %284  ;;  %v282_v50 = vpop.permute.xlu0 %281  ;;  %2620 = vmatpush3.bf16.msra.mxu0 %v2795_v0 }
  0xf0   :  { %vm321_vm14 = vcmp.eq.s32.totalorder %v3284_v62, %v285_v49  ;;  %vm320_vm15 = vcmp.eq.s32.totalorder %v3284_v62, %v282_v50  ;;  %2621 = vmatprep.subr.bf16.mxu0 %v2796_v9 }
  0xf1   :  { %v2215_v51 = vsel %vm321_vm14, 1.0, %v2908_v37  ;;  %v2214_v52 = vsel %vm320_vm15, 1.0, %v2908_v37  ;;  %2510 = vmatmul.mubr.msk.bf16.gmra.mrb[24].mxu0 %vm428_vm4, %v401_v48 }
  0xf2   :  { %v402_v53 = vpack.c.bf16 %v2215_v51, %v2214_v52 }
  0xf3   :  { %v291_v54 = vpop.permute.xlu1 %290  ;;  %v288_v55 = vpop.permute.xlu0 %287  ;;  %2622 = vmatpush3.bf16.msra.mxu0 %v2796_v9 }
  0xf4   :  { %vm323_vm0 = vcmp.eq.s32.totalorder %v3284_v62, %v291_v54  ;;  %vm322_vm1 = vcmp.eq.s32.totalorder %v3284_v62, %v288_v55  ;;  %2513 = vmatprep.mubr.msk.bf16.mxu0 %vm428_vm4, %v402_v53  ;;  %2623 = vmatprep.subr.bf16.mxu0 %v2797_v11 }
  0xf5   :  { %v2217_v56 = vsel %vm323_vm0, 1.0, %v2908_v37  ;;  %v2216_v57 = vsel %vm322_vm1, 1.0, %v2908_v37 }
  0xf6   :  { %v403_v58 = vpack.c.bf16 %v2217_v56, %v2216_v57 }
  0xf7   :  { %2624 = vmatpush3.bf16.msra.mxu0 %v2797_v11 }
  0xf9   :  { %2514 = vmatmul.mubr.msk.bf16.gmra.mrb[28].mxu0 %vm428_vm4, %v403_v58 }
 0x194   :  { %v2487_v13 = vpop.f32.mrb[0].mxu0 }
 0x195   :  { %v511_v16 = vpop.f32.mrb[1].mxu0 }
 0x196   :  { %v2488_v38 = vpop.f32.mrb[2].mxu0 }
 0x197   :  { %v639_v39 = vpack.c.bf16 %v2488_v38, %v2487_v13  ;;  %v514_v40 = vpop.f32.mrb[3].mxu0 }
 0x198   :  { %v638_v41 = vpack.c.bf16 %v514_v40, %v511_v16 }
 0x19a   :  { %2581 = vmatprep.mubr.bf16.mxu1 %v638_v41 }
 0x19b   :  { %2582 = vmatmul.mubr.bf16.vlgmr.msra.gmra.mrb[0].mxu1 %v639_v39 }
 0x19c   :  { %v2491_v42 = vpop.f32.mrb[4].mxu0 }
 0x19d   :  { %v527_v43 = vpop.f32.mrb[5].mxu0 }
 0x19e   :  { %v2492_v44 = vpop.f32.mrb[6].mxu0 }
 0x19f   :  { %v641_v45 = vpack.c.bf16 %v2492_v44, %v2491_v42  ;;  %v530_v46 = vpop.f32.mrb[7].mxu0 }
 0x1a0   :  { %v640_v47 = vpack.c.bf16 %v530_v46, %v527_v43 }
 0x1a2   :  { %2585 = vmatprep.mubr.bf16.mxu1 %v640_v47 }
 0x1a3   :  { %2586 = vmatmul.mubr.bf16.gmra.mrb[4].mxu1 %v641_v45 }
 0x1a4   :  { %v2495_v48 = vpop.f32.mrb[8].mxu0 }
 0x1a5   :  { %v543_v49 = vpop.f32.mrb[9].mxu0 }
 0x1a6   :  { %v2496_v50 = vpop.f32.mrb[10].mxu0 }
 0x1a7   :  { %v643_v51 = vpack.c.bf16 %v2496_v50, %v2495_v48  ;;  %v546_v52 = vpop.f32.mrb[11].mxu0 }
 0x1a8   :  { %v642_v53 = vpack.c.bf16 %v546_v52, %v543_v49 }
 0x1aa   :  { %2589 = vmatprep.mubr.bf16.mxu1 %v642_v53 }
 0x1ab   :  { %2590 = vmatmul.mubr.bf16.gmra.mrb[8].mxu1 %v643_v51 }
 0x1ac   :  { %v2499_v54 = vpop.f32.mrb[12].mxu0 }
 0x1ad   :  { %v559_v55 = vpop.f32.mrb[13].mxu0 }
 0x1ae   :  { %v2500_v56 = vpop.f32.mrb[14].mxu0 }
 0x1af   :  { %v645_v57 = vpack.c.bf16 %v2500_v56, %v2499_v54  ;;  %v562_v58 = vpop.f32.mrb[15].mxu0  ;;  %v2798_v54 = vld [vmem:[#allocation5 + $0x30] sm:$0xff]   ;;  %v3390_v56 = vld [vmem:[#allocation7] sm:$0xff]  }
 0x1b0   :  { %v644_v59 = vpack.c.bf16 %v562_v58, %v559_v55  ;;  %2625 = vmatprep.subr.bf16.mxu0 %v2798_v54  ;;  %v2799_v55 = vld [vmem:[#allocation5 + $0x38] sm:$0xff]  }
 0x1b1   :  { %2626 = vmatpush3.bf16.msra.mxu0 %v2798_v54 }
 0x1b2   :  { %2593 = vmatprep.mubr.bf16.mxu1 %v644_v59  ;;  %2627 = vmatprep.subr.bf16.mxu0 %v2799_v55 }
 0x1b3   :  { %2594 = vmatmul.mubr.bf16.gmra.mrb[12].mxu1 %v645_v57  ;;  %v2909_v57 = vmov 1  }
 0x1b4   :  { %v2503_v60 = vpop.f32.mrb[16].mxu0  ;;  %2755 = vset.pattern.permute.xlu1 %v2909_v57  ;;  %2754 = vset.pattern.permute.xlu0 %v2909_v57 }
 0x1b5   :  { %v575_v61 = vpop.f32.mrb[17].mxu0  ;;  %2628 = vmatpush3.bf16.msra.mxu0 %v2799_v55  ;;  %1851 = vperm.xlu1 %2755, %v3117_v21  }
 0x1b6   :  { %v2504_v63 = vpop.f32.mrb[18].mxu0  ;;  %2661 = vmatprep.subr.bf16.mxu0 %v3390_v56  ;;  %1848 = vperm.xlu0 %2754, %v3122_v22  }
 0x1b7   :  { %v647_v0 = vpack.c.bf16 %v2504_v63, %v2503_v60  ;;  %v578_v9 = vpop.f32.mrb[19].mxu0  ;;  %v2803_v60 = vld [vmem:[#allocation7 + $0x18] sm:$0xff]  }
 0x1b8   :  { %v646_v11 = vpack.c.bf16 %v578_v9, %v575_v61 }
 0x1b9   :  { %1800 = vperm.xlu1 %2755, %v3028_v2  }
 0x1ba   :  { %2597 = vmatprep.mubr.bf16.mxu1 %v646_v11  ;;  %1803 = vperm.xlu0 %2754, %v3040_v4  }
 0x1bb   :  { %2598 = vmatmul.mubr.bf16.gmra.mrb[16].mxu1 %v647_v0 }
 0x1bc   :  { %v2507_v13 = vpop.f32.mrb[20].mxu0 }
 0x1bd   :  { %v591_v16 = vpop.f32.mrb[21].mxu0  ;;  %1854 = vperm.xlu1 %2755, %v3134_v24   ;;  %v2801_v24 = vld [vmem:[#allocation7 + $0x8] sm:$0xff]  }
 0x1be   :  { %v2508_v38 = vpop.f32.mrb[22].mxu0  ;;  %1857 = vperm.xlu0 %2754, %v3129_v23  }
 0x1bf   :  { %v649_v39 = vpack.c.bf16 %v2508_v38, %v2507_v13  ;;  %v594_v40 = vpop.f32.mrb[23].mxu0  ;;  %v2804_v38 = vld [vmem:[#allocation7 + $0x20] sm:$0xff]  }
 0x1c0   :  { %v648_v41 = vpack.c.bf16 %v594_v40, %v591_v16 }
 0x1c1   :  { %1806 = vperm.xlu1 %2755, %v3023_v1   ;;  %v3425_v1 = vld [vmem:[%s3627_s5] ss:$0 sm:$0xff] }
 0x1c2   :  { %2601 = vmatprep.mubr.bf16.mxu1 %v648_v41  ;;  %1809 = vperm.xlu0 %2754, %v3035_v3  }
 0x1c3   :  { %2602 = vmatmul.mubr.bf16.gmra.mrb[20].mxu1 %v649_v39 }
 0x1c4   :  { %v2511_v42 = vpop.f32.mrb[24].mxu0 }
 0x1c5   :  { %v607_v43 = vpop.f32.mrb[25].mxu0  ;;  %1860 = vperm.xlu1 %2755, %v3146_v26  }
 0x1c6   :  { %v2512_v44 = vpop.f32.mrb[26].mxu0  ;;  %1863 = vperm.xlu0 %2754, %v3141_v25  }
 0x1c7   :  { %v651_v45 = vpack.c.bf16 %v2512_v44, %v2511_v42  ;;  %v610_v46 = vpop.f32.mrb[27].mxu0 }
 0x1c8   :  { %v650_v47 = vpack.c.bf16 %v610_v46, %v607_v43  ;;  %v2805_v46 = vld [vmem:[#allocation7 + $0x28] sm:$0xff]  }
 0x1c9   :  { %1812 = vperm.xlu1 %2755, %v3052_v6  }
 0x1ca   :  { %2605 = vmatprep.mubr.bf16.mxu1 %v650_v47  ;;  %1815 = vperm.xlu0 %2754, %v3047_v5  }
 0x1cb   :  { %2606 = vmatmul.mubr.bf16.gmra.mrb[24].mxu1 %v651_v45 }
 0x1cc   :  { %v2515_v48 = vpop.f32.mrb[28].mxu0 }
 0x1cd   :  { %v623_v49 = vpop.f32.mrb[29].mxu0  ;;  %1866 = vperm.xlu1 %2755, %v3158_v28  }
 0x1ce   :  { %v2516_v50 = vpop.f32.mrb[30].mxu0  ;;  %1869 = vperm.xlu0 %2754, %v3153_v27  }
 0x1cf   :  { %v653_v51 = vpack.c.bf16 %v2516_v50, %v2515_v48  ;;  %v626_v52 = vpop.f32.mrb[31].mxu0 }
 0x1d0   :  { %v652_v53 = vpack.c.bf16 %v626_v52, %v623_v49 }
 0x1d1   :  { %1818 = vperm.xlu1 %2755, %v3064_v8  }
 0x1d2   :  { %2609 = vmatprep.mubr.bf16.mxu1 %v652_v53  ;;  %1821 = vperm.xlu0 %2754, %v3059_v7  }
 0x1d3   :  { %2610 = vmatmul.mubr.bf16.gmra.mrb[28].mxu1 %v653_v51 }
 0x1d5   :  { %1872 = vperm.xlu1 %2755, %v3172_v30  }
 0x1d6   :  { %1875 = vperm.xlu0 %2754, %v3165_v29  }
 0x1d9   :  { %1824 = vperm.xlu1 %2755, %v3076_v12  }
 0x1da   :  { %1827 = vperm.xlu0 %2754, %v3069_v10  }
 0x1dd   :  { %1878 = vperm.xlu1 %2755, %v3184_v32  }
 0x1de   :  { %1881 = vperm.xlu0 %2754, %v3179_v31   ;;  %v2802_v31 = vld [vmem:[#allocation7 + $0x10] sm:$0xff]  }
 0x1e1   :  { %1830 = vperm.xlu1 %2755, %v3086_v15  }
 0x1e2   :  { %1833 = vperm.xlu0 %2754, %v3081_v14  }
 0x1e5   :  { %1884 = vperm.xlu1 %2755, %v3196_v34  }
 0x1e6   :  { %1887 = vperm.xlu0 %2754, %v3191_v33  }
 0x1e9   :  { %1836 = vperm.xlu1 %2755, %v3098_v18  }
 0x1ea   :  { %1839 = vperm.xlu0 %2754, %v3093_v17  }
 0x1ed   :  { %1890 = vperm.xlu1 %2755, %v3208_v36  }
 0x1ee   :  { %1893 = vperm.xlu0 %2754, %v3203_v35  }
 0x1f1   :  { %1842 = vperm.xlu1 %2755, %v3110_v20  }
 0x1f2   :  { %1845 = vperm.xlu0 %2754, %v3105_v19  }
 0x26e   :  { %v2583_v2 = vpop.f32.mrb[0].mxu1 }
 0x26f   :  { %v1209_v3 = vadd.f32 %v2583_v2, %v3425_v1  ;;  %v1073_v4 = vpop.f32.mrb[1].mxu1 }
 0x270   :  { %v1207_v5 = vadd.f32 %v3425_v1, %v1073_v4  ;;  %v2584_v6 = vpop.f32.mrb[2].mxu1 }
 0x271   :  { %v1210_v7 = vadd.f32 %v2584_v6, %v3425_v1  ;;  %v1076_v8 = vpop.f32.mrb[3].mxu1  ;;  %v1241_v12 = vmax.f32 %v1209_v3, 0.0 }
 0x272   :  { %v1208_v10 = vadd.f32 %v3425_v1, %v1076_v8  ;;  %v1239_v15 = vmax.f32 %v1207_v5, 0.0 }
 0x273   :  { %v1242_v14 = vmax.f32 %v1210_v7, 0.0 }
 0x274   :  { %v1240_v17 = vmax.f32 %v1208_v10, 0.0 }
 0x275   :  { %v1272_v18 = vpack.c.bf16 %v1242_v14, %v1241_v12 }
 0x276   :  { %v1271_v21 = vpack.c.bf16 %v1240_v17, %v1239_v15  ;;  %v2587_v22 = vpop.f32.mrb[4].mxu1 }
 0x277   :  { %v1213_v23 = vadd.f32 %v2587_v22, %v3425_v1  ;;  %v1089_v20 = vpop.f32.mrb[5].mxu1 }
 0x278   :  { %v1211_v25 = vadd.f32 %v3425_v1, %v1089_v20  ;;  %v2588_v26 = vpop.f32.mrb[6].mxu1  ;;  %2629 = vmatprep.mubr.bf16.mxu0 %v1271_v21 }
 0x279   :  { %v1214_v19 = vadd.f32 %v2588_v26, %v3425_v1  ;;  %v1092_v27 = vpop.f32.mrb[7].mxu1  ;;  %2630 = vmatmul.mubr.bf16.vlgmr.msra.gmra.mrb[32].mxu0 %v1272_v18  ;;  %v1245_v29 = vmax.f32 %v1213_v23, 0.0 }
 0x27a   :  { %v1212_v28 = vadd.f32 %v3425_v1, %v1092_v27  ;;  %2662 = vmatpush3.bf16.msra.mxu0 %v3390_v56  ;;  %v1243_v32 = vmax.f32 %v1211_v25, 0.0 }
 0x27b   :  { %v1246_v30 = vmax.f32 %v1214_v19, 0.0  ;;  %2663 = vmatprep.subr.bf16.mxu0 %v2801_v24 }
 0x27c   :  { %v1244_v33 = vmax.f32 %v1212_v28, 0.0 }
 0x27d   :  { %v1274_v34 = vpack.c.bf16 %v1246_v30, %v1245_v29 }
 0x27e   :  { %v1273_v35 = vpack.c.bf16 %v1244_v33, %v1243_v32  ;;  %v2591_v36 = vpop.f32.mrb[8].mxu1  ;;  %2664 = vmatpush3.bf16.msra.mxu0 %v2801_v24 }
 0x27f   :  { %v1217_v58 = vadd.f32 %v2591_v36, %v3425_v1  ;;  %v1105_v59 = vpop.f32.mrb[9].mxu1  ;;  %2665 = vmatprep.subr.bf16.mxu0 %v2802_v31 }
 0x280   :  { %v1215_v61 = vadd.f32 %v3425_v1, %v1105_v59  ;;  %v2592_v63 = vpop.f32.mrb[10].mxu1  ;;  %2633 = vmatprep.mubr.bf16.mxu0 %v1273_v35 }
 0x281   :  { %v1218_v0 = vadd.f32 %v2592_v63, %v3425_v1  ;;  %v1108_v9 = vpop.f32.mrb[11].mxu1  ;;  %2634 = vmatmul.mubr.bf16.gmra.mrb[36].mxu0 %v1274_v34  ;;  %v1249_v13 = vmax.f32 %v1217_v58, 0.0 }
 0x282   :  { %v1216_v11 = vadd.f32 %v3425_v1, %v1108_v9  ;;  %2666 = vmatpush3.bf16.msra.mxu0 %v2802_v31  ;;  %v1247_v39 = vmax.f32 %v1215_v61, 0.0 }
 0x283   :  { %v1250_v16 = vmax.f32 %v1218_v0, 0.0  ;;  %2667 = vmatprep.subr.bf16.mxu0 %v2803_v60 }
 0x284   :  { %v1248_v40 = vmax.f32 %v1216_v11, 0.0 }
 0x285   :  { %v1276_v41 = vpack.c.bf16 %v1250_v16, %v1249_v13 }
 0x286   :  { %v1275_v42 = vpack.c.bf16 %v1248_v40, %v1247_v39  ;;  %v2595_v43 = vpop.f32.mrb[12].mxu1  ;;  %2668 = vmatpush3.bf16.msra.mxu0 %v2803_v60 }
 0x287   :  { %v1221_v44 = vadd.f32 %v2595_v43, %v3425_v1  ;;  %v1121_v45 = vpop.f32.mrb[13].mxu1  ;;  %2669 = vmatprep.subr.bf16.mxu0 %v2804_v38 }
 0x288   :  { %v1219_v47 = vadd.f32 %v3425_v1, %v1121_v45  ;;  %v2596_v48 = vpop.f32.mrb[14].mxu1  ;;  %2637 = vmatprep.mubr.bf16.mxu0 %v1275_v42 }
 0x289   :  { %v1222_v49 = vadd.f32 %v2596_v48, %v3425_v1  ;;  %v1124_v50 = vpop.f32.mrb[15].mxu1  ;;  %2638 = vmatmul.mubr.bf16.gmra.mrb[40].mxu0 %v1276_v41  ;;  %v1253_v52 = vmax.f32 %v1221_v44, 0.0 }
 0x28a   :  { %v1220_v51 = vadd.f32 %v3425_v1, %v1124_v50  ;;  %2670 = vmatpush3.bf16.msra.mxu0 %v2804_v38  ;;  %v1251_v54 = vmax.f32 %v1219_v47, 0.0 }
 0x28b   :  { %v1254_v53 = vmax.f32 %v1222_v49, 0.0  ;;  %2671 = vmatprep.subr.bf16.mxu0 %v2805_v46 }
 0x28c   :  { %v1252_v55 = vmax.f32 %v1220_v51, 0.0 }
 0x28d   :  { %v1278_v56 = vpack.c.bf16 %v1254_v53, %v1253_v52  ;;  %v2806_v53 = vld [vmem:[#allocation7 + $0x30] sm:$0xff]  }
 0x28e   :  { %v1277_v57 = vpack.c.bf16 %v1252_v55, %v1251_v54  ;;  %v2599_v2 = vpop.f32.mrb[16].mxu1  ;;  %2672 = vmatpush3.bf16.msra.mxu0 %v2805_v46  ;;  %v2807_v54 = vld [vmem:[#allocation7 + $0x38] sm:$0xff]   ;;  %v1852_v55 = vpop.permute.xlu1 %1851 }
 0x28f   :  { %v1225_v3 = vadd.f32 %v2599_v2, %v3425_v1  ;;  %v1137_v4 = vpop.f32.mrb[17].mxu1  ;;  %2673 = vmatprep.subr.bf16.mxu0 %v2806_v53  ;;  %vm1912_vm4 = vcmp.eq.s32.totalorder %v3284_v62, %v1852_v55 }
 0x290   :  { %v1223_v5 = vadd.f32 %v3425_v1, %v1137_v4  ;;  %v2600_v6 = vpop.f32.mrb[18].mxu1  ;;  %2641 = vmatprep.mubr.bf16.mxu0 %v1277_v57 }
 0x291   :  { %v1226_v7 = vadd.f32 %v2600_v6, %v3425_v1  ;;  %v1140_v8 = vpop.f32.mrb[19].mxu1  ;;  %2642 = vmatmul.mubr.bf16.gmra.mrb[44].mxu0 %v1278_v56  ;;  %v1257_v12 = vmax.f32 %v1225_v3, 0.0  ;;  %v1849_v56 = vpop.permute.xlu0 %1848 }
 0x292   :  { %v1224_v10 = vadd.f32 %v3425_v1, %v1140_v8  ;;  %v1255_v15 = vmax.f32 %v1223_v5, 0.0  ;;  %2674 = vmatpush3.bf16.msra.mxu0 %v2806_v53  ;;  %vm1911_vm2 = vcmp.eq.s32.totalorder %v3284_v62, %v1849_v56  ;;  %v1801_v3 = vpop.permute.xlu1 %1800 }
 0x293   :  { %v1258_v14 = vmax.f32 %v1226_v7, 0.0  ;;  %2675 = vmatprep.subr.bf16.mxu0 %v2807_v54  ;;  %v2305_v57 = vsel %vm1911_vm2, 1.0, %v2908_v37  ;;  %vm1895_vm3 = vcmp.eq.s32.totalorder %v3284_v62, %v1801_v3 }
 0x294   :  { %v1256_v17 = vmax.f32 %v1224_v10, 0.0  ;;  %v2289_v5 = vsel %vm1895_vm3, 1.0, %v2908_v37 }
 0x295   :  { %v1280_v18 = vpack.c.bf16 %v1258_v14, %v1257_v12  ;;  %v1804_v4 = vpop.permute.xlu0 %1803 }
 0x296   :  { %v1279_v21 = vpack.c.bf16 %v1256_v17, %v1255_v15  ;;  %v2603_v22 = vpop.f32.mrb[20].mxu1  ;;  %2676 = vmatpush3.bf16.msra.mxu0 %v2807_v54  ;;  %vm1896_vm5 = vcmp.eq.s32.totalorder %v3284_v62, %v1804_v4  ;;  %v1855_v8 = vpop.permute.xlu1 %1854 }
 0x297   :  { %v1229_v23 = vadd.f32 %v2603_v22, %v3425_v1  ;;  %v1153_v20 = vpop.f32.mrb[21].mxu1  ;;  %v2290_v6 = vsel %vm1896_vm5, 1.0, %v2908_v37  ;;  %vm1913_vm6 = vcmp.eq.s32.totalorder %v3284_v62, %v1855_v8 }
 0x298   :  { %v1227_v24 = vadd.f32 %v3425_v1, %v1153_v20  ;;  %v2604_v25 = vpop.f32.mrb[22].mxu1  ;;  %2645 = vmatprep.mubr.bf16.mxu0 %v1279_v21  ;;  %v1991_v7 = vpack.c.bf16 %v2290_v6, %v2289_v5  ;;  %v2307_v12 = vsel %vm1913_vm6, 1.0, %v2908_v37 }
 0x299   :  { %v1230_v26 = vadd.f32 %v2604_v25, %v3425_v1  ;;  %v1156_v19 = vpop.f32.mrb[23].mxu1  ;;  %2646 = vmatmul.mubr.bf16.gmra.mrb[48].mxu0 %v1280_v18  ;;  %v1261_v28 = vmax.f32 %v1229_v23, 0.0  ;;  %v1858_v10 = vpop.permute.xlu0 %1857 }
 0x29a   :  { %v1228_v27 = vadd.f32 %v3425_v1, %v1156_v19  ;;  %v1259_v30 = vmax.f32 %v1227_v24, 0.0  ;;  %vm1914_vm7 = vcmp.eq.s32.totalorder %v3284_v62, %v1858_v10  ;;  %2023 = vxpose.xlu0.c.b16.start [1/8] (narrow) %v1991_v7, 64  ;;  %v1807_v17 = vpop.permute.xlu1 %1806 }
 0x29b   :  { %v1262_v29 = vmax.f32 %v1230_v26, 0.0  ;;  %v2308_v14 = vsel %vm1914_vm7, 1.0, %v2908_v37  ;;  %vm1897_vm8 = vcmp.eq.s32.totalorder %v3284_v62, %v1807_v17 }
 0x29c   :  { %v1260_v31 = vmax.f32 %v1228_v27, 0.0  ;;  %v2000_v15 = vpack.c.bf16 %v2308_v14, %v2307_v12  ;;  %v2291_v21 = vsel %vm1897_vm8, 1.0, %v2908_v37  ;;  %v3526_v12 = vld [vmem:[%s3629_s7] ss:$0 sm:$0xff] }
 0x29d   :  { %v1282_v32 = vpack.c.bf16 %v1262_v29, %v1261_v28  ;;  %v1810_v18 = vpop.permute.xlu0 %1809 }
 0x29e   :  { %v1281_v33 = vpack.c.bf16 %v1260_v31, %v1259_v30  ;;  %v2607_v34 = vpop.f32.mrb[24].mxu1  ;;  %vm1898_vm9 = vcmp.eq.s32.totalorder %v3284_v62, %v1810_v18  ;;  %v1861_v20 = vpop.permute.xlu1 %1860 }
 0x29f   :  { %v1233_v35 = vadd.f32 %v2607_v34, %v3425_v1  ;;  %v1169_v36 = vpop.f32.mrb[25].mxu1  ;;  %v2292_v22 = vsel %vm1898_vm9, 1.0, %v2908_v37  ;;  %vm1915_vm10 = vcmp.eq.s32.totalorder %v3284_v62, %v1861_v20 }
 0x2a0   :  { %v1231_v58 = vadd.f32 %v3425_v1, %v1169_v36  ;;  %v2608_v59 = vpop.f32.mrb[26].mxu1  ;;  %2649 = vmatprep.mubr.bf16.mxu0 %v1281_v33  ;;  %v1992_v23 = vpack.c.bf16 %v2292_v22, %v2291_v21  ;;  %v2309_v25 = vsel %vm1915_vm10, 1.0, %v2908_v37 }
 0x2a1   :  { %v1234_v60 = vadd.f32 %v2608_v59, %v3425_v1  ;;  %v1172_v61 = vpop.f32.mrb[27].mxu1  ;;  %2650 = vmatmul.mubr.bf16.gmra.mrb[52].mxu0 %v1282_v32  ;;  %v1265_v0 = vmax.f32 %v1233_v35, 0.0  ;;  %v1864_v24 = vpop.permute.xlu0 %1863 }
 0x2a2   :  { %v1232_v63 = vadd.f32 %v3425_v1, %v1172_v61  ;;  %v1263_v11 = vmax.f32 %v1231_v58, 0.0  ;;  %vm1916_vm11 = vcmp.eq.s32.totalorder %v3284_v62, %v1864_v24  ;;  %2024 = vxpose.xlu0.c.b16.cont [2/8] (narrow) %v1992_v23, 64  ;;  %v1813_v27 = vpop.permute.xlu1 %1812 }
 0x2a3   :  { %v1266_v9 = vmax.f32 %v1234_v60, 0.0  ;;  %v2310_v26 = vsel %vm1916_vm11, 1.0, %v2908_v37  ;;  %vm1899_vm12 = vcmp.eq.s32.totalorder %v3284_v62, %v1813_v27 }
 0x2a4   :  { %v1264_v13 = vmax.f32 %v1232_v63, 0.0  ;;  %v2001_v19 = vpack.c.bf16 %v2310_v26, %v2309_v25  ;;  %v2293_v29 = vsel %vm1899_vm12, 1.0, %v2908_v37 }
 0x2a5   :  { %v1284_v16 = vpack.c.bf16 %v1266_v9, %v1265_v0  ;;  %v1816_v28 = vpop.permute.xlu0 %1815 }
 0x2a6   :  { %v1283_v38 = vpack.c.bf16 %v1264_v13, %v1263_v11  ;;  %v2611_v39 = vpop.f32.mrb[28].mxu1  ;;  %vm1900_vm13 = vcmp.eq.s32.totalorder %v3284_v62, %v1816_v28  ;;  %v1867_v32 = vpop.permute.xlu1 %1866 }
 0x2a7   :  { %v1237_v40 = vadd.f32 %v2611_v39, %v3425_v1  ;;  %v1185_v41 = vpop.f32.mrb[29].mxu1  ;;  %v2294_v30 = vsel %vm1900_vm13, 1.0, %v2908_v37  ;;  %vm1917_vm14 = vcmp.eq.s32.totalorder %v3284_v62, %v1867_v32 }
 0x2a8   :  { %v1235_v42 = vadd.f32 %v3425_v1, %v1185_v41  ;;  %v2612_v43 = vpop.f32.mrb[30].mxu1  ;;  %2653 = vmatprep.mubr.bf16.mxu0 %v1283_v38  ;;  %v1993_v31 = vpack.c.bf16 %v2294_v30, %v2293_v29  ;;  %v2311_v34 = vsel %vm1917_vm14, 1.0, %v2908_v37 }
 0x2a9   :  { %v1238_v44 = vadd.f32 %v2612_v43, %v3425_v1  ;;  %v1188_v45 = vpop.f32.mrb[31].mxu1  ;;  %2654 = vmatmul.mubr.bf16.gmra.mrb[56].mxu0 %v1284_v16  ;;  %v1269_v47 = vmax.f32 %v1237_v40, 0.0  ;;  %v1870_v33 = vpop.permute.xlu0 %1869 }
 0x2aa   :  { %v1236_v46 = vadd.f32 %v3425_v1, %v1188_v45  ;;  %v1267_v49 = vmax.f32 %v1235_v42, 0.0  ;;  %v2306_v1 = vsel %vm1912_vm4, 1.0, %v2908_v37  ;;  %vm1918_vm15 = vcmp.eq.s32.totalorder %v3284_v62, %v1870_v33  ;;  %2025 = vxpose.xlu0.c.b16.cont [3/8] (narrow) %v1993_v31, 64  ;;  %v1819_v58 = vpop.permute.xlu1 %1818 }
 0x2ab   :  { %v1270_v48 = vmax.f32 %v1238_v44, 0.0  ;;  %v1999_v2 = vpack.c.bf16 %v2306_v1, %v2305_v57  ;;  %v2312_v35 = vsel %vm1918_vm15, 1.0, %v2908_v37  ;;  %vm1901_vm0 = vcmp.eq.s32.totalorder %v3284_v62, %v1819_v58 }
 0x2ac   :  { %v1268_v50 = vmax.f32 %v1236_v46, 0.0  ;;  %v2002_v36 = vpack.c.bf16 %v2312_v35, %v2311_v34  ;;  %v2295_v60 = vsel %vm1901_vm0, 1.0, %v2908_v37 }
 0x2ad   :  { %v1286_v51 = vpack.c.bf16 %v1270_v48, %v1269_v47  ;;  %2039 = vxpose.xlu1.c.b16.start [1/8] (narrow) %v1999_v2, 64  ;;  %v1822_v59 = vpop.permute.xlu0 %1821 }
 0x2ae   :  { %v1285_v52 = vpack.c.bf16 %v1268_v50, %v1267_v49  ;;  %vm1902_vm1 = vcmp.eq.s32.totalorder %v3284_v62, %v1822_v59  ;;  %v1873_v0 = vpop.permute.xlu1 %1872 }
 0x2af   :  { %v2296_v61 = vsel %vm1902_vm1, 1.0, %v2908_v37  ;;  %vm1919_vm4 = vcmp.eq.s32.totalorder %v3284_v62, %v1873_v0 }
 0x2b0   :  { %2657 = vmatprep.mubr.bf16.mxu0 %v1285_v52  ;;  %v1994_v63 = vpack.c.bf16 %v2296_v61, %v2295_v60  ;;  %v2313_v11 = vsel %vm1919_vm4, 1.0, %v2908_v37 }
 0x2b1   :  { %2658 = vmatmul.mubr.bf16.gmra.mrb[60].mxu0 %v1286_v51  ;;  %2040 = vxpose.xlu1.c.b16.cont [2/8] (narrow) %v2000_v15, 64  ;;  %v1876_v9 = vpop.permute.xlu0 %1875 }
 0x2b2   :  { %vm1920_vm2 = vcmp.eq.s32.totalorder %v3284_v62, %v1876_v9  ;;  %2026 = vxpose.xlu0.c.b16.cont [4/8] (narrow) %v1994_v63, 64  ;;  %v1825_v38 = vpop.permute.xlu1 %1824 }
 0x2b3   :  { %v2314_v13 = vsel %vm1920_vm2, 1.0, %v2908_v37  ;;  %vm1903_vm3 = vcmp.eq.s32.totalorder %v3284_v62, %v1825_v38 }
 0x2b4   :  { %v2003_v16 = vpack.c.bf16 %v2314_v13, %v2313_v11  ;;  %v2297_v40 = vsel %vm1903_vm3, 1.0, %v2908_v37 }
 0x2b5   :  { %2041 = vxpose.xlu1.c.b16.cont [3/8] (narrow) %v2001_v19, 64  ;;  %v1828_v39 = vpop.permute.xlu0 %1827 }
 0x2b6   :  { %vm1904_vm5 = vcmp.eq.s32.totalorder %v3284_v62, %v1828_v39  ;;  %v1879_v43 = vpop.permute.xlu1 %1878 }
 0x2b7   :  { %v2298_v41 = vsel %vm1904_vm5, 1.0, %v2908_v37  ;;  %vm1921_vm6 = vcmp.eq.s32.totalorder %v3284_v62, %v1879_v43 }
 0x2b8   :  { %v1995_v42 = vpack.c.bf16 %v2298_v41, %v2297_v40  ;;  %v2315_v45 = vsel %vm1921_vm6, 1.0, %v2908_v37 }
 0x2b9   :  { %2042 = vxpose.xlu1.c.b16.cont [4/8] (narrow) %v2002_v36, 64  ;;  %v1882_v44 = vpop.permute.xlu0 %1881 }
 0x2ba   :  { %vm1922_vm7 = vcmp.eq.s32.totalorder %v3284_v62, %v1882_v44  ;;  %2027 = vxpose.xlu0.c.b16.cont [5/8] (narrow) %v1995_v42, 64  ;;  %v1831_v48 = vpop.permute.xlu1 %1830 }
 0x2bb   :  { %v2316_v46 = vsel %vm1922_vm7, 1.0, %v2908_v37  ;;  %vm1905_vm8 = vcmp.eq.s32.totalorder %v3284_v62, %v1831_v48 }
 0x2bc   :  { %v2004_v47 = vpack.c.bf16 %v2316_v46, %v2315_v45  ;;  %v2299_v50 = vsel %vm1905_vm8, 1.0, %v2908_v37 }
 0x2bd   :  { %2043 = vxpose.xlu1.c.b16.cont [5/8] (narrow) %v2003_v16, 64  ;;  %v1834_v49 = vpop.permute.xlu0 %1833 }
 0x2be   :  { %vm1906_vm9 = vcmp.eq.s32.totalorder %v3284_v62, %v1834_v49  ;;  %v1885_v53 = vpop.permute.xlu1 %1884 }
 0x2bf   :  { %v2300_v51 = vsel %vm1906_vm9, 1.0, %v2908_v37  ;;  %vm1923_vm10 = vcmp.eq.s32.totalorder %v3284_v62, %v1885_v53 }
 0x2c0   :  { %v1996_v52 = vpack.c.bf16 %v2300_v51, %v2299_v50  ;;  %v2317_v55 = vsel %vm1923_vm10, 1.0, %v2908_v37 }
 0x2c1   :  { %2044 = vxpose.xlu1.c.b16.cont [6/8] (narrow) %v2004_v47, 64  ;;  %v1888_v54 = vpop.permute.xlu0 %1887 }
 0x2c2   :  { %vm1924_vm11 = vcmp.eq.s32.totalorder %v3284_v62, %v1888_v54  ;;  %2028 = vxpose.xlu0.c.b16.cont [6/8] (narrow) %v1996_v52, 64  ;;  %v1837_v57 = vpop.permute.xlu1 %1836 }
 0x2c3   :  { %v2318_v56 = vsel %vm1924_vm11, 1.0, %v2908_v37  ;;  %vm1907_vm12 = vcmp.eq.s32.totalorder %v3284_v62, %v1837_v57 }
 0x2c4   :  { %v2005_v1 = vpack.c.bf16 %v2318_v56, %v2317_v55  ;;  %v2301_v3 = vsel %vm1907_vm12, 1.0, %v2908_v37 }
 0x2c5   :  { %v1840_v2 = vpop.permute.xlu0 %1839 }
 0x2c6   :  { %vm1908_vm13 = vcmp.eq.s32.totalorder %v3284_v62, %v1840_v2  ;;  %2045 = vxpose.xlu1.c.b16.cont [7/8] (narrow) %v2005_v1, 64  ;;  %v1891_v6 = vpop.permute.xlu1 %1890 }
 0x2c7   :  { %v2302_v4 = vsel %vm1908_vm13, 1.0, %v2908_v37  ;;  %vm1925_vm14 = vcmp.eq.s32.totalorder %v3284_v62, %v1891_v6 }
 0x2c8   :  { %v1997_v5 = vpack.c.bf16 %v2302_v4, %v2301_v3  ;;  %v2319_v8 = vsel %vm1925_vm14, 1.0, %v2908_v37 }
 0x2c9   :  { %v1894_v7 = vpop.permute.xlu0 %1893 }
 0x2ca   :  { %vm1926_vm15 = vcmp.eq.s32.totalorder %v3284_v62, %v1894_v7  ;;  %2029 = vxpose.xlu0.c.b16.cont [7/8] (narrow) %v1997_v5, 64  ;;  %v1843_v15 = vpop.permute.xlu1 %1842 }
 0x2cb   :  { %v2320_v10 = vsel %vm1926_vm15, 1.0, %v2908_v37  ;;  %vm1909_vm0 = vcmp.eq.s32.totalorder %v3284_v62, %v1843_v15 }
 0x2cc   :  { %v2006_v14 = vpack.c.bf16 %v2320_v10, %v2319_v8  ;;  %v2303_v23 = vsel %vm1909_vm0, 1.0, %v2908_v37 }
 0x2cd   :  { %v1846_v17 = vpop.permute.xlu0 %1845 }
 0x2ce   :  { %vm1910_vm1 = vcmp.eq.s32.totalorder %v3284_v62, %v1846_v17  ;;  %2046 = vxpose.xlu1.c.b16.end [8/8] (narrow) %v2006_v14, 64 }
 0x2cf   :  { %v2304_v20 = vsel %vm1910_vm1, 1.0, %v2908_v37 }
 0x2d0   :  { %v1998_v26 = vpack.c.bf16 %v2304_v20, %v2303_v23 }
 0x2d2   :  { %2030 = vxpose.xlu0.c.b16.end [8/8] (narrow) %v1998_v26, 64 }
 0x34c   :  { %v2631_v18 = vpop.f32.mrb[32].mxu0 }
 0x34d   :  { %v1401_v21 = vadd.f32 %v2631_v18, %v3526_v12  ;;  %v1392_v22 = vpop.f32.mrb[33].mxu0 }
 0x34e   :  { %v1393_v24 = vadd.f32 %v3526_v12, %v1392_v22  ;;  %v2632_v25 = vpop.f32.mrb[34].mxu0 }
 0x34f   :  { %v1404_v19 = vadd.f32 %v2632_v25, %v3526_v12  ;;  %v1395_v27 = vpop.f32.mrb[35].mxu0  ;;  %v1521_v29 = vmax.f32 %v1401_v21, 0.0 }
 0x350   :  { %v1396_v28 = vadd.f32 %v3526_v12, %v1395_v27  ;;  %v1519_v30 = vmax.f32 %v1393_v24, 0.0 }
 0x351   :  { %v1522_v62 = vmax.f32 %v1404_v19, 0.0 }
 0x352   :  { %v1520_v31 = vmax.f32 %v1396_v28, 0.0 }
 0x353   :  { %v1552_v32 = vpack.c.bf16 %v1522_v62, %v1521_v29 }
 0x354   :  { %v1551_v33 = vpack.c.bf16 %v1520_v31, %v1519_v30  ;;  %v2635_v34 = vpop.f32.mrb[36].mxu0 }
 0x355   :  { %v1417_v35 = vadd.f32 %v2635_v34, %v3526_v12  ;;  %v1408_v37 = vpop.f32.mrb[37].mxu0 }
 0x356   :  { %v1409_v36 = vadd.f32 %v3526_v12, %v1408_v37  ;;  %v2636_v58 = vpop.f32.mrb[38].mxu0  ;;  %2677 = vmatprep.mubr.bf16.mxu0 %v1551_v33 }
 0x357   :  { %v1420_v59 = vadd.f32 %v2636_v58, %v3526_v12  ;;  %v1411_v60 = vpop.f32.mrb[39].mxu0  ;;  %2678 = vmatmul.mubr.bf16.vlgmr.msra.gmra.mrb[64].mxu0 %v1552_v32  ;;  %v1525_v63 = vmax.f32 %v1417_v35, 0.0 }
 0x358   :  { %v1412_v61 = vadd.f32 %v3526_v12, %v1411_v60  ;;  %v1523_v9 = vmax.f32 %v1409_v36, 0.0 }
 0x359   :  { %v1526_v0 = vmax.f32 %v1420_v59, 0.0 }
 0x35a   :  { %v1524_v11 = vmax.f32 %v1412_v61, 0.0 }
 0x35b   :  { %v1554_v13 = vpack.c.bf16 %v1526_v0, %v1525_v63 }
 0x35c   :  { %v1553_v16 = vpack.c.bf16 %v1524_v11, %v1523_v9  ;;  %v2639_v38 = vpop.f32.mrb[40].mxu0 }
 0x35d   :  { %v1433_v39 = vadd.f32 %v2639_v38, %v3526_v12  ;;  %v1424_v40 = vpop.f32.mrb[41].mxu0 }
 0x35e   :  { %v1425_v41 = vadd.f32 %v3526_v12, %v1424_v40  ;;  %v2640_v42 = vpop.f32.mrb[42].mxu0  ;;  %2681 = vmatprep.mubr.bf16.mxu0 %v1553_v16 }
 0x35f   :  { %v1436_v43 = vadd.f32 %v2640_v42, %v3526_v12  ;;  %v1427_v44 = vpop.f32.mrb[43].mxu0  ;;  %2682 = vmatmul.mubr.bf16.gmra.mrb[68].mxu0 %v1554_v13  ;;  %v1529_v46 = vmax.f32 %v1433_v39, 0.0 }
 0x360   :  { %v1428_v45 = vadd.f32 %v3526_v12, %v1427_v44  ;;  %v1527_v48 = vmax.f32 %v1425_v41, 0.0 }
 0x361   :  { %v1530_v47 = vmax.f32 %v1436_v43, 0.0 }
 0x362   :  { %v1528_v49 = vmax.f32 %v1428_v45, 0.0 }
 0x363   :  { %v1556_v50 = vpack.c.bf16 %v1530_v47, %v1529_v46 }
 0x364   :  { %v1555_v51 = vpack.c.bf16 %v1528_v49, %v1527_v48  ;;  %v2643_v52 = vpop.f32.mrb[44].mxu0 }
 0x365   :  { %v1449_v53 = vadd.f32 %v2643_v52, %v3526_v12  ;;  %v1440_v54 = vpop.f32.mrb[45].mxu0 }
 0x366   :  { %v1441_v55 = vadd.f32 %v3526_v12, %v1440_v54  ;;  %v2644_v56 = vpop.f32.mrb[46].mxu0  ;;  %2685 = vmatprep.mubr.bf16.mxu0 %v1555_v51 }
 0x367   :  { %v1452_v1 = vadd.f32 %v2644_v56, %v3526_v12  ;;  %v1443_v57 = vpop.f32.mrb[47].mxu0  ;;  %2686 = vmatmul.mubr.bf16.gmra.mrb[72].mxu0 %v1556_v50  ;;  %v1533_v3 = vmax.f32 %v1449_v53, 0.0 }
 0x368   :  { %v1444_v2 = vadd.f32 %v3526_v12, %v1443_v57  ;;  %v1531_v5 = vmax.f32 %v1441_v55, 0.0 }
 0x369   :  { %v1534_v4 = vmax.f32 %v1452_v1, 0.0 }
 0x36a   :  { %v1532_v6 = vmax.f32 %v1444_v2, 0.0  ;;  %v2047_v2 = vpop.trf.xlu1 }
 0x36b   :  { %v1558_v7 = vpack.c.bf16 %v1534_v4, %v1533_v3  ;;  %2087 = vmatprep.mubr.bf16.mxu1 %v2047_v2  ;;  %v3567_v4 = vld [vmem:[%s3631_s9] ss:$0 sm:$0xff]  ;;  %s2910_s9 = smov [#allocation8]  }
 0x36c   :  { %v1557_v8 = vpack.c.bf16 %v1532_v6, %v1531_v5  ;;  %v2647_v10 = vpop.f32.mrb[48].mxu0  ;;  %s2161_s14 = sshll.u32 %s2910_s9, 4  ;;  %s2162_s14 = int_to_ptr.vmem [resolvable:$true] %s2161_s14 }
 0x36d   :  { %v1465_v14 = vadd.f32 %v2647_v10, %v3526_v12  ;;  %v1456_v15 = vpop.f32.mrb[49].mxu0  ;;  %s2874_s19 = scalar_lea.vmem %s2162_s14, 1024  ;;  %p2879_p11 = scmp.lt.s32.totalorder %s2162_s14, %s2162_s14 }
 0x36e   :  { %v1457_v17 = vadd.f32 %v3526_v12, %v1456_v15  ;;  %v2648_v18 = vpop.f32.mrb[50].mxu0  ;;  %2689 = vmatprep.mubr.bf16.mxu0 %v1557_v8  ;;  %p2875_p10 = scmp.ne.s32.totalorder %s2162_s14, %s2874_s19  ;;  %p2880_p12 = scmp.lt.s32.totalorder %s2874_s19, %s2874_s19 }
 0x36f   :  { %v1468_v21 = vadd.f32 %v2648_v18, %v3526_v12  ;;  %v1459_v22 = vpop.f32.mrb[51].mxu0  ;;  %2690 = vmatmul.mubr.bf16.gmra.mrb[76].mxu0 %v1558_v7  ;;  %v1537_v20 = vmax.f32 %v1465_v14, 0.0 }
 0x370   :  { %v1460_v23 = vadd.f32 %v3526_v12, %v1459_v22  ;;  %v1535_v25 = vmax.f32 %v1457_v17, 0.0  ;;  %p2881_p13 = por %p2880_p12, %p2879_p11 }
 0x371   :  { %v1538_v24 = vmax.f32 %v1468_v21, 0.0 }
 0x372   :  { %v1536_v26 = vmax.f32 %v1460_v23, 0.0  ;;  %p2882_p0 = pnand %p2881_p13, %p2875_p10 }
 0x373   :  { %v1560_v19 = vpack.c.bf16 %v1538_v24, %v1537_v20 }
 0x374   :  { %v1559_v27 = vpack.c.bf16 %v1536_v26, %v1535_v25  ;;  %v2651_v28 = vpop.f32.mrb[52].mxu0 }
 0x375   :  { %v1481_v29 = vadd.f32 %v2651_v28, %v3526_v12  ;;  %v1472_v62 = vpop.f32.mrb[53].mxu0 }
 0x376   :  { %v1473_v30 = vadd.f32 %v3526_v12, %v1472_v62  ;;  %v2652_v31 = vpop.f32.mrb[54].mxu0  ;;  %2693 = vmatprep.mubr.bf16.mxu0 %v1559_v27 }
 0x377   :  { %v1484_v32 = vadd.f32 %v2652_v31, %v3526_v12  ;;  %v1475_v33 = vpop.f32.mrb[55].mxu0  ;;  %2694 = vmatmul.mubr.bf16.gmra.mrb[80].mxu0 %v1560_v19  ;;  %v1541_v35 = vmax.f32 %v1481_v29, 0.0 }
 0x378   :  { %v1476_v34 = vadd.f32 %v3526_v12, %v1475_v33  ;;  %v1539_v36 = vmax.f32 %v1473_v30, 0.0 }
 0x379   :  { %v1542_v37 = vmax.f32 %v1484_v32, 0.0 }
 0x37a   :  { %v1540_v58 = vmax.f32 %v1476_v34, 0.0 }
 0x37b   :  { %v1562_v59 = vpack.c.bf16 %v1542_v37, %v1541_v35 }
 0x37c   :  { %v1561_v60 = vpack.c.bf16 %v1540_v58, %v1539_v36  ;;  %v2655_v61 = vpop.f32.mrb[56].mxu0 }
 0x37d   :  { %v1497_v63 = vadd.f32 %v2655_v61, %v3526_v12  ;;  %v1488_v0 = vpop.f32.mrb[57].mxu0 }
 0x37e   :  { %v1489_v9 = vadd.f32 %v3526_v12, %v1488_v0  ;;  %v2656_v11 = vpop.f32.mrb[58].mxu0  ;;  %2697 = vmatprep.mubr.bf16.mxu0 %v1561_v60 }
 0x37f   :  { %v1500_v13 = vadd.f32 %v2656_v11, %v3526_v12  ;;  %v1491_v16 = vpop.f32.mrb[59].mxu0  ;;  %2698 = vmatmul.mubr.bf16.gmra.mrb[84].mxu0 %v1562_v59  ;;  %v1545_v39 = vmax.f32 %v1497_v63, 0.0 }
 0x380   :  { %v1492_v38 = vadd.f32 %v3526_v12, %v1491_v16  ;;  %v1543_v41 = vmax.f32 %v1489_v9, 0.0 }
 0x381   :  { %v1546_v40 = vmax.f32 %v1500_v13, 0.0 }
 0x382   :  { %v1544_v42 = vmax.f32 %v1492_v38, 0.0 }
 0x383   :  { %v1564_v43 = vpack.c.bf16 %v1546_v40, %v1545_v39 }
 0x384   :  { %v1563_v44 = vpack.c.bf16 %v1544_v42, %v1543_v41  ;;  %v2659_v45 = vpop.f32.mrb[60].mxu0 }
 0x385   :  { %v1513_v46 = vadd.f32 %v2659_v45, %v3526_v12  ;;  %v1504_v47 = vpop.f32.mrb[61].mxu0 }
 0x386   :  { %v1505_v48 = vadd.f32 %v3526_v12, %v1504_v47  ;;  %v2660_v49 = vpop.f32.mrb[62].mxu0  ;;  %2701 = vmatprep.mubr.bf16.mxu0 %v1563_v44 }
 0x387   :  { %v1516_v50 = vadd.f32 %v2660_v49, %v3526_v12  ;;  %v1507_v51 = vpop.f32.mrb[63].mxu0  ;;  %2702 = vmatmul.mubr.bf16.gmra.mrb[88].mxu0 %v1564_v43  ;;  %v1549_v53 = vmax.f32 %v1513_v46, 0.0 }
 0x388   :  { %v1508_v52 = vadd.f32 %v3526_v12, %v1507_v51  ;;  %v1547_v55 = vmax.f32 %v1505_v48, 0.0 }
 0x389   :  { %v1550_v54 = vmax.f32 %v1516_v50, 0.0 }
 0x38a   :  { %v1548_v56 = vmax.f32 %v1508_v52, 0.0 }
 0x38b   :  { %v1566_v1 = vpack.c.bf16 %v1550_v54, %v1549_v53 }
 0x38c   :  { %v1565_v57 = vpack.c.bf16 %v1548_v56, %v1547_v55 }
 0x38e   :  { %2705 = vmatprep.mubr.bf16.mxu0 %v1565_v57 }
 0x38f   :  { %2706 = vmatmul.mubr.bf16.gmra.mrb[92].mxu0 %v1566_v1 }
 0x42a   :  { %v2679_v3 = vpop.f32.mrb[64].mxu0 }
 0x42b   :  { %v1672_v5 = vpop.f32.mrb[65].mxu0  ;;  %v1681_v12 = vadd.f32 %v2679_v3, %v3567_v4 }
 0x42c   :  { %v2680_v6 = vpop.f32.mrb[66].mxu0  ;;  %v1673_v10 = vadd.f32 %v3567_v4, %v1672_v5 }
 0x42d   :  { %v1684_v7 = vadd.f32 %v2680_v6, %v3567_v4  ;;  %v1675_v8 = vpop.f32.mrb[67].mxu0 }
 0x42e   :  { %v1676_v14 = vadd.f32 %v3567_v4, %v1675_v8 }
 0x42f   :  { %v2008_v15 = vpack.c.bf16 %v1684_v7, %v1681_v12 }
 0x430   :  { %v2007_v17 = vpack.c.bf16 %v1676_v14, %v1673_v10 }
 0x432   :  { %v2683_v18 = vpop.f32.mrb[68].mxu0 }
 0x433   :  { %v1688_v21 = vpop.f32.mrb[69].mxu0  ;;  %v3574_v23 = vadd.f32 %v2683_v18, %v3567_v4 }
 0x434   :  { %v2684_v22 = vpop.f32.mrb[70].mxu0  ;;  %v1689_v25 = vadd.f32 %v3567_v4, %v1688_v21 }
 0x435   :  { %v1700_v20 = vadd.f32 %v2684_v22, %v3567_v4  ;;  %v1691_v24 = vpop.f32.mrb[71].mxu0 }
 0x436   :  { %v1692_v26 = vadd.f32 %v3567_v4, %v1691_v24 }
 0x437   :  { %v2010_v19 = vpack.c.bf16 %v1700_v20, %v3574_v23 }
 0x438   :  { %v2009_v27 = vpack.c.bf16 %v1692_v26, %v1689_v25  ;;  %v2031_v26 = vpop.trf.xlu0 }
 0x43a   :  { %v2687_v28 = vpop.f32.mrb[72].mxu0 }
 0x43b   :  { %v1704_v29 = vpop.f32.mrb[73].mxu0  ;;  %v3581_v30 = vadd.f32 %v2687_v28, %v3567_v4 }
 0x43c   :  { %v2688_v62 = vpop.f32.mrb[74].mxu0  ;;  %v1705_v33 = vadd.f32 %v3567_v4, %v1704_v29 }
 0x43d   :  { %v3584_v31 = vadd.f32 %v2688_v62, %v3567_v4  ;;  %v1707_v32 = vpop.f32.mrb[75].mxu0 }
 0x43e   :  { %v1708_v34 = vadd.f32 %v3567_v4, %v1707_v32 }
 0x43f   :  { %v2012_v35 = vpack.c.bf16 %v3584_v31, %v3581_v30 }
 0x440   :  { %v2011_v37 = vpack.c.bf16 %v1708_v34, %v1705_v33 }
 0x442   :  { %v2691_v36 = vpop.f32.mrb[76].mxu0 }
 0x443   :  { %v1720_v58 = vpop.f32.mrb[77].mxu0  ;;  %v1729_v60 = vadd.f32 %v2691_v36, %v3567_v4 }
 0x444   :  { %v2692_v59 = vpop.f32.mrb[78].mxu0  ;;  %v1721_v0 = vadd.f32 %v3567_v4, %v1720_v58 }
 0x445   :  { %v1732_v61 = vadd.f32 %v2692_v59, %v3567_v4  ;;  %v1723_v63 = vpop.f32.mrb[79].mxu0 }
 0x446   :  { %v1724_v9 = vadd.f32 %v3567_v4, %v1723_v63 }
 0x447   :  { %v2014_v11 = vpack.c.bf16 %v1732_v61, %v1729_v60 }
 0x448   :  { %v2013_v13 = vpack.c.bf16 %v1724_v9, %v1721_v0 }
 0x44a   :  { %v2695_v16 = vpop.f32.mrb[80].mxu0 }
 0x44b   :  { %v1736_v38 = vpop.f32.mrb[81].mxu0  ;;  %v1745_v40 = vadd.f32 %v2695_v16, %v3567_v4 }
 0x44c   :  { %v2696_v39 = vpop.f32.mrb[82].mxu0  ;;  %v1737_v43 = vadd.f32 %v3567_v4, %v1736_v38 }
 0x44d   :  { %v1748_v41 = vadd.f32 %v2696_v39, %v3567_v4  ;;  %v1739_v42 = vpop.f32.mrb[83].mxu0 }
 0x44e   :  { %v1740_v44 = vadd.f32 %v3567_v4, %v1739_v42 }
 0x44f   :  { %v2016_v45 = vpack.c.bf16 %v1748_v41, %v1745_v40 }
 0x450   :  { %v2015_v46 = vpack.c.bf16 %v1740_v44, %v1737_v43 }
 0x452   :  { %v2699_v47 = vpop.f32.mrb[84].mxu0  ;;  %2437 = vmatprep.subr.bf16.mxu1 %v2015_v46 }
 0x453   :  { %v1752_v48 = vpop.f32.mrb[85].mxu0  ;;  %2438 = vmatpush3.bf16.msra.mxu1 %v2007_v17  ;;  %v1761_v50 = vadd.f32 %v2699_v47, %v3567_v4 }
 0x454   :  { %v2700_v49 = vpop.f32.mrb[86].mxu0  ;;  %2439 = vmatprep.subr.bf16.mxu1 %v2016_v45  ;;  %v1753_v53 = vadd.f32 %v3567_v4, %v1752_v48 }
 0x455   :  { %v1764_v51 = vadd.f32 %v2700_v49, %v3567_v4  ;;  %v1755_v52 = vpop.f32.mrb[87].mxu0 }
 0x456   :  { %v1756_v54 = vadd.f32 %v3567_v4, %v1755_v52 }
 0x457   :  { %v2018_v55 = vpack.c.bf16 %v1764_v51, %v1761_v50  ;;  %2440 = vmatpush3.bf16.msra.mxu1 %v2008_v15 }
 0x458   :  { %v2017_v56 = vpack.c.bf16 %v1756_v54, %v1753_v53 }
 0x45a   :  { %v2703_v1 = vpop.f32.mrb[88].mxu0  ;;  %2441 = vmatprep.subr.bf16.mxu1 %v2017_v56 }
 0x45b   :  { %v1768_v57 = vpop.f32.mrb[89].mxu0  ;;  %2442 = vmatpush3.bf16.msra.mxu1 %v2009_v27  ;;  %v1777_v3 = vadd.f32 %v2703_v1, %v3567_v4  ;;  %v2032_v27 = vpop.trf.xlu0 }
 0x45c   :  { %v2704_v2 = vpop.f32.mrb[90].mxu0  ;;  %2443 = vmatprep.subr.bf16.mxu1 %v2018_v55  ;;  %v1769_v12 = vadd.f32 %v3567_v4, %v1768_v57 }
 0x45d   :  { %v1780_v5 = vadd.f32 %v2704_v2, %v3567_v4  ;;  %v1771_v6 = vpop.f32.mrb[91].mxu0 }
 0x45e   :  { %v1772_v7 = vadd.f32 %v3567_v4, %v1771_v6 }
 0x45f   :  { %v2020_v8 = vpack.c.bf16 %v1780_v5, %v1777_v3  ;;  %2444 = vmatpush3.bf16.msra.mxu1 %v2010_v19  ;;  %v2048_v19 = vpop.trf.xlu1  ;;  %v2033_v29 = vpop.trf.xlu0 }
 0x460   :  { %v2019_v10 = vpack.c.bf16 %v1772_v7, %v1769_v12 }
 0x462   :  { %v2707_v14 = vpop.f32.mrb[92].mxu0  ;;  %2445 = vmatprep.subr.bf16.mxu1 %v2019_v10 }
 0x463   :  { %v1784_v15 = vpop.f32.mrb[93].mxu0  ;;  %2446 = vmatpush3.bf16.msra.mxu1 %v2011_v37  ;;  %v1793_v18 = vadd.f32 %v2707_v14, %v3567_v4  ;;  %v2049_v28 = vpop.trf.xlu1 }
 0x464   :  { %v2708_v17 = vpop.f32.mrb[94].mxu0  ;;  %2447 = vmatprep.subr.bf16.mxu1 %v2020_v8  ;;  %v1785_v23 = vadd.f32 %v3567_v4, %v1784_v15 }
 0x465   :  { %v1796_v21 = vadd.f32 %v2708_v17, %v3567_v4  ;;  %v1787_v22 = vpop.f32.mrb[95].mxu0 }
 0x466   :  { %v1788_v20 = vadd.f32 %v3567_v4, %v1787_v22  ;;  %v2034_v4 = vpop.trf.xlu0 }
 0x467   :  { %v2022_v24 = vpack.c.bf16 %v1796_v21, %v1793_v18  ;;  %2448 = vmatpush3.bf16.msra.mxu1 %v2012_v35  ;;  %v2050_v62 = vpop.trf.xlu1 }
 0x468   :  { %v2021_v25 = vpack.c.bf16 %v1788_v20, %v1785_v23 }
 0x46a   :  { %2449 = vmatprep.subr.bf16.mxu1 %v2021_v25 }
 0x46b   :  { %2450 = vmatpush3.bf16.msra.mxu1 %v2013_v13 }
 0x46c   :  { %2451 = vmatprep.subr.bf16.mxu1 %v2022_v24 }
 0x46f   :  { %2452 = vmatpush3.bf16.msra.mxu1 %v2014_v11 }
 0x472   :  { %2088 = vmatmul.mubr.bf16.vlgmr.msra.gmra.mrb[32].mxu1 %v2031_v26 }
 0x473   :  { %2095 = vmatprep.mubr.bf16.mxu1 %v2048_v19 }
 0x47a   :  { %2096 = vmatmul.mubr.bf16.gmra.mrb[36].mxu1 %v2032_v27 }
 0x47b   :  { %2103 = vmatprep.mubr.bf16.mxu1 %v2049_v28 }
 0x482   :  { %2104 = vmatmul.mubr.bf16.gmra.mrb[40].mxu1 %v2033_v29 }
 0x483   :  { %2111 = vmatprep.mubr.bf16.mxu1 %v2050_v62 }
 0x48a   :  { %2112 = vmatmul.mubr.bf16.gmra.mrb[44].mxu1 %v2034_v4 }
 0x545   :  { %v2453_v30 = vpop.f32.mrb[32].mxu1 }
 0x546   :  { %v2454_v31 = vpop.f32.mrb[33].mxu1 }
 0x547   :  { %v2455_v32 = vadd.f32 %v2454_v31, %v2453_v30  ;;  %v2456_v33 = vpop.f32.mrb[34].mxu1 }
 0x548   :  { %v2457_v34 = vpop.f32.mrb[35].mxu1 }
 0x549   :  { %v2458_v35 = vadd.f32 %v2457_v34, %v2456_v33  ;;  %2148 = vst [vmem:[#allocation8] sm:$0xff] %v2455_v32 }
 0x54b   :  { %2149 = vst [vmem:[#allocation8 + $0x8] sm:$0xff] %v2458_v35 }
 0x54d   :  { %v2459_v37 = vpop.f32.mrb[36].mxu1 }
 0x54e   :  { %v2460_v36 = vpop.f32.mrb[37].mxu1 }
 0x54f   :  { %v2461_v58 = vadd.f32 %v2460_v36, %v2459_v37  ;;  %v2462_v59 = vpop.f32.mrb[38].mxu1 }
 0x550   :  { %v2463_v60 = vpop.f32.mrb[39].mxu1 }
 0x551   :  { %v2464_v61 = vadd.f32 %v2463_v60, %v2462_v59  ;;  %2150 = vst [vmem:[#allocation8 + $0x10] sm:$0xff] %v2461_v58 }
 0x553   :  { %2151 = vst [vmem:[#allocation8 + $0x18] sm:$0xff] %v2464_v61 }
 0x555   :  { %v2465_v63 = vpop.f32.mrb[40].mxu1 }
 0x556   :  { %v2466_v0 = vpop.f32.mrb[41].mxu1 }
 0x557   :  { %v2467_v9 = vadd.f32 %v2466_v0, %v2465_v63  ;;  %v2468_v11 = vpop.f32.mrb[42].mxu1 }
 0x558   :  { %v2469_v13 = vpop.f32.mrb[43].mxu1 }
 0x559   :  { %v2470_v16 = vadd.f32 %v2469_v13, %v2468_v11  ;;  %2152 = vst [vmem:[#allocation8 + $0x20] sm:$0xff] %v2467_v9 }
 0x55b   :  { %2153 = vst [vmem:[#allocation8 + $0x28] sm:$0xff] %v2470_v16 }
 0x55d   :  { %v2471_v38 = vpop.f32.mrb[44].mxu1 }
 0x55e   :  { %v2472_v39 = vpop.f32.mrb[45].mxu1 }
 0x55f   :  { %v2473_v40 = vadd.f32 %v2472_v39, %v2471_v38  ;;  %v2474_v41 = vpop.f32.mrb[46].mxu1 }
 0x560   :  { %v2475_v42 = vpop.f32.mrb[47].mxu1 }
 0x561   :  { %v2476_v43 = vadd.f32 %v2475_v42, %v2474_v41  ;;  %2154 = vst [vmem:[#allocation8 + $0x30] sm:$0xff] %v2473_v40 }
 0x563   :  { %2155 = vst [vmem:[#allocation8 + $0x38] sm:$0xff] %v2476_v43 }
 0x564   :  { %2885 = shalt.err (!%p2882_p0)
}
 0x565   :  { %s2886_s22 = scalar_lea.hbm %s3632_s10, 1024 }
 0x566   :  { %p2887_p1 = scmp.ne.s32.totalorder %s3632_s10, %s2886_s22  ;;  %p2890_p2 = scmp.lt.u32.totalorder %s2886_s22, %s3632_s10 }
 0x568   :  { %p2892_p3 = pnand %p2890_p2, %p2887_p1 }
 0x56a   :  { %2895 = shalt.err (!%p2892_p3)
}
 0x56b   :  { %s2911_s29 = smov 128   ;;  %s2912_s4 = smov 8  }
 0x56c   :  { %2167 = dma.vmem_to_hbm [thread:$0]  %s2162_s14, 1024, %s3632_s10, [#allocation4], %s2911_s29, %s2911_s29, %s2912_s4  }
 0x56d   :  { %2900 = dma.done.wait [#allocation4], 1024  }
 0x56e   :  { %2901 = vsyncadd [#allocation4], 4294966272 }
 0x56f   :  { %2171 = vsyncpa [#allocation3], 1 }
 0x570   :  { %2172 = vsyncpa [#allocation6], 1 }
 0x571   :  { %2173 = vsyncpa [#allocation4], 1 }

</bundles_post_ra>
